<compile_context>
chip_gen: v6e
topology: v6e:2x2x1
jax: 0.10.0
libtpu: 0.0.40
codegen_flags: <defaults>
</compile_context>

<pallas_src>
import functools

import jax
import jax.numpy as jnp
from jax.experimental import pallas as pl
from jax.experimental.pallas import tpu as pltpu


def _round_up(v, m):
    return (v + m - 1) // m * m


# ----------------------------------------------------------------------------
# Fused kernel
# ----------------------------------------------------------------------------
def _bottleneck_kernel(x_ref, w1_ref, b1_ref, w2_ref, b2_ref, w3_ref, b3_ref,
                       wsqt_ref, wex_ref, o_ref, h1_sc, *opt_scratch,
                       g, p_rows, wp, ho, wo, lout, mid, has_ds, stage_taps):
    """Whole Bottleneck block for `g` images (one grid step).

    x_ref:   (g, p_rows, cin)  bf16, zero-padded flattened input images
    w1_ref:  (cin, mid [+cout]) bf16 -- conv1 (and downsample) with BN folded
    w2_ref:  (9*mid, mid) bf16, w3_ref: (mid, cout) bf16 -- BN folded
    wsqt_ref/wex_ref: (se_mid, cout) f32 -- SE weights
    o_ref:   (g, lout, cout) bf16; row q = y*wp + x (x >= wo columns are garbage
             and are stripped by the wrapper)
    """
    f32 = jnp.float32
    inv_hw = 1.0 / float(ho * wo)

    def divmod_const(r, d):
        # Exact divmod of small non-negative integers (held in f32) by a Python
        # int constant, using multiply + truncate (no vector integer divide).
        q = ((r + 0.5) * (1.0 / float(d))).astype(jnp.int32).astype(f32)
        return q, r - q * float(d)

    # ---- masks built in-kernel (no HBM mask inputs) --------------------------
    r = jax.lax.broadcasted_iota(jnp.int32, (p_rows, 1), 0).astype(f32)
    yy, xx = divmod_const(r, wp)
    interior = ((yy >= 1.0) & (yy <= float(ho)) &
                (xx >= 1.0) & (xx <= float(wo)))                  # (p_rows, 1)

    q = jax.lax.broadcasted_iota(jnp.int32, (lout, 1), 0).astype(f32)
    xq = divmod_const(q, wp)[1]
    ovalid = ((xq < float(wo)) & (q < float(ho * wp))).astype(f32)  # (lout, 1)

    # ---- conv1 (+ fused downsample 1x1), BN1 folded, ReLU, halo zeroed -------
    idn_list = []
    for b in range(g):
        acc1 = jnp.dot(x_ref[b], w1_ref[...],
                       preferred_element_type=f32) + b1_ref[...]
        h1 = jnp.where(interior, jnp.maximum(acc1[:, :mid], 0.0), 0.0)
        h1_sc[b * p_rows:(b + 1) * p_rows, :] = h1.astype(h1_sc.dtype)
        if has_ds:
            idn_list.append(acc1[wp + 1:wp + 1 + lout, mid:])      # f32
        else:
            idn_list.append(x_ref[b, wp + 1:wp + 1 + lout, :].astype(f32))

    # ---- conv2 (3x3) via MXU matmul(s) over shifted h1 row slices ------------
    if stage_taps:
        # mid < 128: build one (g*lout, 9*mid) operand, single big-K matmul.
        taps_sc = opt_scratch[0]
        for b in range(g):
            for k in range(9):
                off = (k // 3) * wp + (k % 3)
                taps_sc[b * lout:(b + 1) * lout, k * mid:(k + 1) * mid] = (
                    h1_sc[b * p_rows + off:b * p_rows + off + lout, :])
        acc2 = jnp.dot(taps_sc[...], w2_ref[...], preferred_element_type=f32)
    else:
        # mid >= 128: skip the staging stores; accumulate nine K=mid dots
        # straight from h1 slices (loads only).  Wrapper enforces g == 1 here.
        acc2 = jnp.dot(h1_sc[0:lout, :], w2_ref[0:mid, :],
                       preferred_element_type=f32)
        for k in range(1, 9):
            off = (k // 3) * wp + (k % 3)
            acc2 = acc2 + jnp.dot(h1_sc[off:off + lout, :],
                                  w2_ref[k * mid:(k + 1) * mid, :],
                                  preferred_element_type=f32)
    h2 = jnp.maximum(acc2 + b2_ref[...], 0.0).astype(jnp.bfloat16)

    # ---- conv3 (1x1), BN3 folded ---------------------------------------------
    h3 = jnp.dot(h2, w3_ref[...], preferred_element_type=f32) + b3_ref[...]

    # ---- SE gate + residual + final ReLU, per image --------------------------
    for b in range(g):
        h3_b = h3[b * lout:(b + 1) * lout, :]                      # (lout, cout)
        pooled = jnp.sum(h3_b * ovalid, axis=0, keepdims=True) * inv_hw  # (1, cout)
        # Squeeze/excite on the VPU + XLU (keeps the tiny GEMVs off the MXU):
        #   s    = relu(pooled @ wsq)      via lane reduction of (se_mid, cout)
        #   gate = sigmoid(s @ wex)        via sublane reduction of (se_mid, cout)
        s_col = jnp.maximum(
            jnp.sum(pooled * wsqt_ref[...], axis=1, keepdims=True), 0.0)   # (se_mid, 1)
        gate = jax.nn.sigmoid(
            jnp.sum(s_col * wex_ref[...], axis=0, keepdims=True))          # (1, cout)
        out_b = jnp.maximum(h3_b * gate + idn_list[b], 0.0)
        o_ref[b] = out_b.astype(o_ref.dtype)


# ----------------------------------------------------------------------------
# pallas_call wrapper
# ----------------------------------------------------------------------------
def _pick_group(n, lout, stage_taps, target_rows=512):
    """Images per grid step: raise the matmul M-dim for small images while
    keeping >= 2 grid steps when possible (v7x has two TensorCores)."""
    if not stage_taps:
        return 1
    g = 1
    for cand in range(2, n + 1):
        if n % cand == 0 and cand * lout <= target_rows and n // cand >= 2:
            g = cand
    return g


def _vmem_estimate(g, p_rows, cin, ctot, mid, cout, se_mid, lout, stage_taps):
    est = 0
    est += 2 * g * p_rows * cin * 2             # input block (double buffered)
    est += 2 * g * lout * cout * 2              # output block (double buffered)
    est += (cin * ctot + 9 * mid * mid + mid * cout) * 2
    est += (ctot + mid + cout + 2 * se_mid * cout) * 4
    est += g * p_rows * mid * 2                 # h1 scratch
    if stage_taps:
        est += g * lout * 9 * mid * 2           # taps scratch
    est += g * p_rows * ctot * 4                # acc1 (f32)
    est += g * lout * (9 * mid + 3 * cout) * 4  # acc2 / h3 / identity / out (f32)
    return est


def _mosaic_params(vmem_bytes):
    kwargs = dict(dimension_semantics=("parallel",))
    # Raise the scoped VMEM limit only when the working set needs it, staying
    # well under v7x's 64 MiB physical VMEM.
    if vmem_bytes > 24 * 1024 * 1024:
        kwargs["vmem_limit_bytes"] = min(int(vmem_bytes * 1.3), 56 * 1024 * 1024)
    return pltpu.CompilerParams(**kwargs)


def bottleneck_forward(x_nchw, prep, stride=1, group=None):
    n, cin, h, w = x_nchw.shape
    mid = prep["mid"]
    cout = prep["w3f"].shape[1]
    se_mid = prep["wsqt"].shape[0]
    ctot = prep["wcat"].shape[1]
    has_ds = prep["has_ds"]
    stage_taps = mid < 128
    if not has_ds:
        assert cin == cout

    # This module applies its stride at conv1 / the downsample conv (both 1x1),
    # which is identical to subsampling the input first and running stride 1.
    x = jnp.transpose(x_nchw, (0, 2, 3, 1))                    # NCHW -> NHWC
    xs = x[:, ::stride, ::stride, :]
    ho, wo = xs.shape[1], xs.shape[2]
    wp, hp = wo + 2, ho + 3                                    # pad W (1,1), H (1,2)
    lout = _round_up(ho * wp, 8)                               # aligned output rows
    p_rows = _round_up(max(hp * wp, lout + 2 * wp + 2), 8)     # aligned padded rows

    xpad = jnp.pad(xs, ((0, 0), (1, 2), (1, 1), (0, 0))).reshape(n, hp * wp, cin)
    if p_rows > hp * wp:
        xpad = jnp.pad(xpad, ((0, 0), (0, p_rows - hp * wp), (0, 0)))
    xpad = xpad.astype(jnp.bfloat16)

    g = 1 if not stage_taps else (group if group is not None
                                  else _pick_group(n, lout, stage_taps))
    assert n % g == 0

    kern = functools.partial(
        _bottleneck_kernel, g=g, p_rows=p_rows, wp=wp, ho=ho, wo=wo, lout=lout,
        mid=mid, has_ds=has_ds, stage_taps=stage_taps)

    scratch = [pltpu.VMEM((g * p_rows, mid), jnp.bfloat16)]
    if stage_taps:
        scratch.append(pltpu.VMEM((g * lout, 9 * mid), jnp.bfloat16))

    est = _vmem_estimate(g, p_rows, cin, ctot, mid, cout, se_mid, lout, stage_taps)

    out = pl.pallas_call(
        kern,
        out_shape=jax.ShapeDtypeStruct((n, lout, cout), jnp.bfloat16),
        grid=(n // g,),
        in_specs=[
            pl.BlockSpec((g, p_rows, cin), lambda i: (i, 0, 0)),
            pl.BlockSpec((cin, ctot), lambda i: (0, 0)),
            pl.BlockSpec((1, ctot), lambda i: (0, 0)),
            pl.BlockSpec((9 * mid, mid), lambda i: (0, 0)),
            pl.BlockSpec((1, mid), lambda i: (0, 0)),
            pl.BlockSpec((mid, cout), lambda i: (0, 0)),
            pl.BlockSpec((1, cout), lambda i: (0, 0)),
            pl.BlockSpec((se_mid, cout), lambda i: (0, 0)),
            pl.BlockSpec((se_mid, cout), lambda i: (0, 0)),
        ],
        out_specs=pl.BlockSpec((g, lout, cout), lambda i: (i, 0, 0)),
        scratch_shapes=scratch,
        compiler_params=_mosaic_params(est),
    )(xpad, prep["wcat"], prep["bcat"], prep["w2f"], prep["b2"],
      prep["w3f"], prep["b3"], prep["wsqt"], prep["wex"])

    out = out[:, :ho * wp, :].reshape(n, ho, wp, cout)[:, :, :wo, :]
    return jnp.transpose(out, (0, 3, 1, 2)).astype(jnp.float32)


# ----------------------------------------------------------------------------
# Parameter init (synthetic, deterministic) with BN folding into weights
# ----------------------------------------------------------------------------
def _fold_bn(key, c, eps=1e-5):
    k1, k2, k3, k4 = jax.random.split(key, 4)
    gamma = 1.0 + 0.1 * jax.random.normal(k1, (c,), jnp.float32)
    beta = 0.1 * jax.random.normal(k2, (c,), jnp.float32)
    mean = 0.1 * jax.random.normal(k3, (c,), jnp.float32)
    var = 1.0 + 0.1 * jax.random.uniform(k4, (c,), jnp.float32)
    scale = gamma / jnp.sqrt(var + eps)
    bias = beta - mean * scale
    return scale, bias


def init_params(key, cin, cout, stride, reduction):
    mid = cout // 4
    se_mid = max(cout // reduction, 1)
    has_ds = (stride != 1) or (cin != cout)
    keys = jax.random.split(key, 10)

    def nrm(k, shape, s=0.1):
        return s * jax.random.normal(k, shape, jnp.float32)

    w1 = nrm(keys[0], (cin, mid))                    # torch (mid,cin,1,1) -> (cin,mid)
    s1, b1 = _fold_bn(keys[1], mid)
    w2_oihw = nrm(keys[2], (mid, mid, 3, 3))         # torch OIHW
    s2, b2 = _fold_bn(keys[3], mid)
    w3 = nrm(keys[4], (mid, cout))
    s3, b3 = _fold_bn(keys[5], cout)
    wsq = nrm(keys[6], (cout, se_mid))               # SE convs have no bias (spec)
    wex = nrm(keys[7], (se_mid, cout))

    w1f = w1 * s1[None, :]
    if has_ds:
        wd = nrm(keys[8], (cin, cout))
        sd, bd = _fold_bn(keys[9], cout)
        wcat = jnp.concatenate([w1f, wd * sd[None, :]], axis=1)
        bcat = jnp.concatenate([b1, bd])[None, :]
    else:
        wcat, bcat = w1f, b1[None, :]

    # OIHW -> (kh*kw*cin, cout) with tap index k = dy*3 + dx, BN2 scale folded.
    w2f = jnp.transpose(w2_oihw, (2, 3, 1, 0)).reshape(9 * mid, mid) * s2[None, :]

    return dict(
        mid=mid, has_ds=has_ds,
        wcat=wcat.astype(jnp.bfloat16), bcat=bcat.astype(jnp.float32),
        w2f=w2f.astype(jnp.bfloat16), b2=b2[None, :].astype(jnp.float32),
        w3f=(w3 * s3[None, :]).astype(jnp.bfloat16), b3=b3[None, :].astype(jnp.float32),
        wsqt=jnp.transpose(wsq), wex=wex,            # (se_mid, cout) each, f32
    )


# ----------------------------------------------------------------------------
# Pure-JAX reference (same bf16 cast points at MXU boundaries)
# ----------------------------------------------------------------------------
def bottleneck_reference(x_nchw, prep, stride=1):
    n, cin, h, w = x_nchw.shape
    mid = prep["mid"]
    cout = prep["w3f"].shape[1]
    x = jnp.transpose(x_nchw, (0, 2, 3, 1))
    xs = x[:, ::stride, ::stride, :]
    ho, wo = xs.shape[1], xs.shape[2]
    m = n * ho * wo

    xb = xs.astype(jnp.bfloat16)
    acc = jnp.dot(xb.reshape(m, cin), prep["wcat"],
                  preferred_element_type=jnp.float32) + prep["bcat"]
    h1 = jnp.maximum(acc[:, :mid], 0.0).astype(jnp.bfloat16)
    if prep["has_ds"]:
        idn = acc[:, mid:]
    else:
        idn = xb.reshape(m, cin).astype(jnp.float32)

    h1p = jnp.pad(h1.reshape(n, ho, wo, mid), ((0, 0), (1, 1), (1, 1), (0, 0)))
    acc2 = jnp.zeros((m, mid), jnp.float32)
    for k in range(9):
        dy, dx = k // 3, k % 3
        tap = h1p[:, dy:dy + ho, dx:dx + wo, :].reshape(m, mid)
        acc2 = acc2 + jnp.dot(tap, prep["w2f"][k * mid:(k + 1) * mid, :],
                              preferred_element_type=jnp.float32)
    h2 = jnp.maximum(acc2 + prep["b2"], 0.0).astype(jnp.bfloat16)
    h3 = jnp.dot(h2, prep["w3f"], preferred_element_type=jnp.float32) + prep["b3"]

    h3n = h3.reshape(n, ho * wo, cout)
    pooled = jnp.mean(h3n, axis=1)
    s = jnp.maximum(jnp.dot(pooled, jnp.transpose(prep["wsqt"])), 0.0)
    gate = jax.nn.sigmoid(jnp.dot(s, prep["wex"]))
    out = jnp.maximum(h3n * gate[:, None, :] + idn.reshape(n, ho * wo, cout), 0.0)
    return jnp.transpose(out.reshape(n, ho, wo, cout), (0, 3, 1, 2))


# ----------------------------------------------------------------------------
if __name__ == "__main__":
    key = jax.random.PRNGKey(0)

    configs = [
        # (N, Cin, Cout, H, W, stride, reduction)
        (2, 32, 64, 8, 8, 1, 16),      # downsample (channel expansion), staged taps
        (4, 64, 64, 8, 8, 1, 16),      # identity shortcut, image grouping (g=2)
        (2, 32, 64, 16, 16, 2, 16),    # strided downsample
        (2, 256, 512, 8, 8, 1, 16),    # mid=128 -> direct 9-tap accumulation path
    ]
    for idx, (n, cin, cout, h, w, stride, red) in enumerate(configs):
        kx, kp, key = jax.random.split(key, 3)
        x = jax.random.normal(kx, (n, cin, h, w), jnp.float32)
        prep = init_params(kp, cin, cout, stride, red)

        out = jax.block_until_ready(bottleneck_forward(x, prep, stride))
        ref = jax.block_until_ready(bottleneck_reference(x, prep, stride))

        ho = (h - 1) // stride + 1
        wo = (w - 1) // stride + 1
        assert out.shape == (n, cout, ho, wo), (idx, out.shape)
        ok = bool(jnp.allclose(out, ref, rtol=2e-2, atol=2e-2))
        assert ok, f"config {idx}: mismatch vs reference"

    print("KERNEL_OK")
</pallas_src>

<mosaic_0001>
module attributes {stable_mosaic.version = 11 : i64} {
  func.func @_bottleneck_kernel(%arg0: i32, %arg1: memref<1x112x32xbf16, #tpu.memory_space<vmem>>, %arg2: memref<32x80xbf16, #tpu.memory_space<vmem>>, %arg3: memref<1x80xf32, #tpu.memory_space<vmem>>, %arg4: memref<144x16xbf16, #tpu.memory_space<vmem>>, %arg5: memref<1x16xf32, #tpu.memory_space<vmem>>, %arg6: memref<16x64xbf16, #tpu.memory_space<vmem>>, %arg7: memref<1x64xf32, #tpu.memory_space<vmem>>, %arg8: memref<4x64xf32, #tpu.memory_space<vmem>>, %arg9: memref<4x64xf32, #tpu.memory_space<vmem>>, %arg10: memref<1x80x64xbf16, #tpu.memory_space<vmem>>, %arg11: memref<112x16xbf16, #tpu.memory_space<vmem>>, %arg12: memref<80x144xbf16, #tpu.memory_space<vmem>>) attributes {dimension_semantics = [#tpu.dimension_semantics<parallel>], iteration_bounds = array<i64: 2>, scalar_prefetch = 0 : i64, scratch_operands = 2 : i64, tpu.core_type = #tpu.core_type<tc>, window_params = [{transform_indices = @transform_0, window_bounds = array<i64: 1, 112, 32>}, {pipeline_mode = #tpu.pipeline_mode<synchronous>, transform_indices = @transform_1, window_bounds = array<i64: 32, 80>}, {pipeline_mode = #tpu.pipeline_mode<synchronous>, transform_indices = @transform_2, window_bounds = array<i64: 1, 80>}, {pipeline_mode = #tpu.pipeline_mode<synchronous>, transform_indices = @transform_3, window_bounds = array<i64: 144, 16>}, {pipeline_mode = #tpu.pipeline_mode<synchronous>, transform_indices = @transform_4, window_bounds = array<i64: 1, 16>}, {pipeline_mode = #tpu.pipeline_mode<synchronous>, transform_indices = @transform_5, window_bounds = array<i64: 16, 64>}, {pipeline_mode = #tpu.pipeline_mode<synchronous>, transform_indices = @transform_6, window_bounds = array<i64: 1, 64>}, {pipeline_mode = #tpu.pipeline_mode<synchronous>, transform_indices = @transform_7, window_bounds = array<i64: 4, 64>}, {pipeline_mode = #tpu.pipeline_mode<synchronous>, transform_indices = @transform_8, window_bounds = array<i64: 4, 64>}, {transform_indices = @transform_9, window_bounds = array<i64: 1, 80, 64>}]} {
    %0 = tpu.iota {dimensions = array<i32: 0>} : vector<112x1xi32>
    %1 = arith.sitofp %0 : vector<112x1xi32> to vector<112x1xf32>
    %cst = arith.constant 5.000000e-01 : f32
    %2 = vector.broadcast %cst : f32 to vector<112x1xf32>
    %3 = arith.addf %1, %2 : vector<112x1xf32>
    %cst_0 = arith.constant 1.000000e-01 : f32
    %4 = vector.broadcast %cst_0 : f32 to vector<112x1xf32>
    %5 = arith.mulf %3, %4 : vector<112x1xf32>
    %6 = arith.fptosi %5 : vector<112x1xf32> to vector<112x1xi32>
    %7 = arith.sitofp %6 : vector<112x1xi32> to vector<112x1xf32>
    %cst_1 = arith.constant 1.000000e+01 : f32
    %8 = vector.broadcast %cst_1 : f32 to vector<112x1xf32>
    %9 = arith.mulf %7, %8 : vector<112x1xf32>
    %10 = arith.subf %1, %9 : vector<112x1xf32>
    %cst_2 = arith.constant 1.000000e+00 : f32
    %11 = vector.broadcast %cst_2 : f32 to vector<112x1xf32>
    %12 = arith.cmpf oge, %7, %11 : vector<112x1xf32>
    %cst_3 = arith.constant 8.000000e+00 : f32
    %13 = vector.broadcast %cst_3 : f32 to vector<112x1xf32>
    %14 = arith.cmpf ole, %7, %13 : vector<112x1xf32>
    %15 = arith.andi %12, %14 : vector<112x1xi1>
    %cst_4 = arith.constant 1.000000e+00 : f32
    %16 = vector.broadcast %cst_4 : f32 to vector<112x1xf32>
    %17 = arith.cmpf oge, %10, %16 : vector<112x1xf32>
    %18 = arith.andi %15, %17 : vector<112x1xi1>
    %cst_5 = arith.constant 8.000000e+00 : f32
    %19 = vector.broadcast %cst_5 : f32 to vector<112x1xf32>
    %20 = arith.cmpf ole, %10, %19 : vector<112x1xf32>
    %21 = arith.andi %18, %20 : vector<112x1xi1>
    %22 = tpu.iota {dimensions = array<i32: 0>} : vector<80x1xi32>
    %23 = arith.sitofp %22 : vector<80x1xi32> to vector<80x1xf32>
    %cst_6 = arith.constant 5.000000e-01 : f32
    %24 = vector.broadcast %cst_6 : f32 to vector<80x1xf32>
    %25 = arith.addf %23, %24 : vector<80x1xf32>
    %cst_7 = arith.constant 1.000000e-01 : f32
    %26 = vector.broadcast %cst_7 : f32 to vector<80x1xf32>
    %27 = arith.mulf %25, %26 : vector<80x1xf32>
    %28 = arith.fptosi %27 : vector<80x1xf32> to vector<80x1xi32>
    %29 = arith.sitofp %28 : vector<80x1xi32> to vector<80x1xf32>
    %cst_8 = arith.constant 1.000000e+01 : f32
    %30 = vector.broadcast %cst_8 : f32 to vector<80x1xf32>
    %31 = arith.mulf %29, %30 : vector<80x1xf32>
    %32 = arith.subf %23, %31 : vector<80x1xf32>
    %cst_9 = arith.constant 8.000000e+00 : f32
    %33 = vector.broadcast %cst_9 : f32 to vector<80x1xf32>
    %34 = arith.cmpf olt, %32, %33 : vector<80x1xf32>
    %cst_10 = arith.constant 8.000000e+01 : f32
    %35 = vector.broadcast %cst_10 : f32 to vector<80x1xf32>
    %36 = arith.cmpf olt, %23, %35 : vector<80x1xf32>
    %37 = arith.andi %34, %36 : vector<80x1xi1>
    %38 = arith.extui %37 : vector<80x1xi1> to vector<80x1xi32>
    %39 = arith.sitofp %38 : vector<80x1xi32> to vector<80x1xf32>
    %c0 = arith.constant 0 : index
    %c0_11 = arith.constant 0 : index
    %c0_12 = arith.constant 0 : index
    %40 = vector.load %arg1[%c0, %c0_11, %c0_12] : memref<1x112x32xbf16, #tpu.memory_space<vmem>>, vector<1x112x32xbf16>
    %41 = vector.shape_cast %40 : vector<1x112x32xbf16> to vector<112x32xbf16>
    %c0_13 = arith.constant 0 : index
    %c0_14 = arith.constant 0 : index
    %42 = vector.load %arg2[%c0_13, %c0_14] : memref<32x80xbf16, #tpu.memory_space<vmem>>, vector<32x80xbf16>
    %cst_15 = arith.constant dense<0.000000e+00> : vector<112x80xf32>
    %43 = tpu.matmul %41, %42, %cst_15 {dimension_numbers = #tpu.dot_dimension_numbers<[1], [0], [0], [1], [0, 0, 1, 1], [], []>} : vector<112x32xbf16>, vector<32x80xbf16>, vector<112x80xf32> -> vector<112x80xf32>
    %c0_16 = arith.constant 0 : index
    %c0_17 = arith.constant 0 : index
    %44 = vector.load %arg3[%c0_16, %c0_17] : memref<1x80xf32, #tpu.memory_space<vmem>>, vector<1x80xf32>
    %45 = vector.broadcast %44 : vector<1x80xf32> to vector<112x80xf32>
    %46 = arith.addf %43, %45 : vector<112x80xf32>
    %47 = vector.extract_strided_slice %46 {offsets = [0, 0], sizes = [112, 16], strides = [1, 1]} : vector<112x80xf32> to vector<112x16xf32>
    %cst_18 = arith.constant 0.000000e+00 : f32
    %48 = vector.broadcast %cst_18 : f32 to vector<112x16xf32>
    %49 = arith.maximumf %47, %48 : vector<112x16xf32>
    %cst_19 = arith.constant 0.000000e+00 : f32
    %50 = vector.shape_cast %21 : vector<112x1xi1> to vector<112x1xi1>
    %51 = vector.broadcast %50 : vector<112x1xi1> to vector<112x16xi1>
    %52 = vector.broadcast %cst_19 : f32 to vector<112x16xf32>
    %53 = arith.select %51, %49, %52 : vector<112x16xi1>, vector<112x16xf32>
    %54 = arith.truncf %53 : vector<112x16xf32> to vector<112x16xbf16>
    %c0_20 = arith.constant 0 : index
    %c0_21 = arith.constant 0 : index
    %55 = vector.load %arg11[%c0_20, %c0_21] : memref<112x16xbf16, #tpu.memory_space<vmem>>, vector<112x16xbf16>
    tpu.vector_store %arg11[%c0_20, %c0_21], %54 {strides = array<i32>} : memref<112x16xbf16, #tpu.memory_space<vmem>>, vector<112x16xbf16>,
    %56 = vector.extract_strided_slice %46 {offsets = [11, 16], sizes = [80, 64], strides = [1, 1]} : vector<112x80xf32> to vector<80x64xf32>
    %c0_22 = arith.constant 0 : index
    %c0_23 = arith.constant 0 : index
    %57 = vector.load %arg11[%c0_22, %c0_23] : memref<112x16xbf16, #tpu.memory_space<vmem>>, vector<80x16xbf16>
    %c0_24 = arith.constant 0 : index
    %c0_25 = arith.constant 0 : index
    %58 = vector.load %arg12[%c0_24, %c0_25] : memref<80x144xbf16, #tpu.memory_space<vmem>>, vector<80x16xbf16>
    tpu.vector_store %arg12[%c0_24, %c0_25], %57 {strides = array<i32>} : memref<80x144xbf16, #tpu.memory_space<vmem>>, vector<80x16xbf16>,
    %c1 = arith.constant 1 : index
    %c0_26 = arith.constant 0 : index
    %59 = vector.load %arg11[%c1, %c0_26] : memref<112x16xbf16, #tpu.memory_space<vmem>>, vector<80x16xbf16>
    %c0_27 = arith.constant 0 : index
    %c16 = arith.constant 16 : index
    %60 = vector.load %arg12[%c0_27, %c16] : memref<80x144xbf16, #tpu.memory_space<vmem>>, vector<80x16xbf16>
    tpu.vector_store %arg12[%c0_27, %c16], %59 {strides = array<i32>} : memref<80x144xbf16, #tpu.memory_space<vmem>>, vector<80x16xbf16>,
    %c2 = arith.constant 2 : index
    %c0_28 = arith.constant 0 : index
    %61 = vector.load %arg11[%c2, %c0_28] : memref<112x16xbf16, #tpu.memory_space<vmem>>, vector<80x16xbf16>
    %c0_29 = arith.constant 0 : index
    %c32 = arith.constant 32 : index
    %62 = vector.load %arg12[%c0_29, %c32] : memref<80x144xbf16, #tpu.memory_space<vmem>>, vector<80x16xbf16>
    tpu.vector_store %arg12[%c0_29, %c32], %61 {strides = array<i32>} : memref<80x144xbf16, #tpu.memory_space<vmem>>, vector<80x16xbf16>,
    %c10 = arith.constant 10 : index
    %c0_30 = arith.constant 0 : index
    %63 = vector.load %arg11[%c10, %c0_30] : memref<112x16xbf16, #tpu.memory_space<vmem>>, vector<80x16xbf16>
    %c0_31 = arith.constant 0 : index
    %c48 = arith.constant 48 : index
    %64 = vector.load %arg12[%c0_31, %c48] : memref<80x144xbf16, #tpu.memory_space<vmem>>, vector<80x16xbf16>
    tpu.vector_store %arg12[%c0_31, %c48], %63 {strides = array<i32>} : memref<80x144xbf16, #tpu.memory_space<vmem>>, vector<80x16xbf16>,
    %c11 = arith.constant 11 : index
    %c0_32 = arith.constant 0 : index
    %65 = vector.load %arg11[%c11, %c0_32] : memref<112x16xbf16, #tpu.memory_space<vmem>>, vector<80x16xbf16>
    %c0_33 = arith.constant 0 : index
    %c64 = arith.constant 64 : index
    %66 = vector.load %arg12[%c0_33, %c64] : memref<80x144xbf16, #tpu.memory_space<vmem>>, vector<80x16xbf16>
    tpu.vector_store %arg12[%c0_33, %c64], %65 {strides = array<i32>} : memref<80x144xbf16, #tpu.memory_space<vmem>>, vector<80x16xbf16>,
    %c12 = arith.constant 12 : index
    %c0_34 = arith.constant 0 : index
    %67 = vector.load %arg11[%c12, %c0_34] : memref<112x16xbf16, #tpu.memory_space<vmem>>, vector<80x16xbf16>
    %c0_35 = arith.constant 0 : index
    %c80 = arith.constant 80 : index
    %68 = vector.load %arg12[%c0_35, %c80] : memref<80x144xbf16, #tpu.memory_space<vmem>>, vector<80x16xbf16>
    tpu.vector_store %arg12[%c0_35, %c80], %67 {strides = array<i32>} : memref<80x144xbf16, #tpu.memory_space<vmem>>, vector<80x16xbf16>,
    %c20 = arith.constant 20 : index
    %c0_36 = arith.constant 0 : index
    %69 = vector.load %arg11[%c20, %c0_36] : memref<112x16xbf16, #tpu.memory_space<vmem>>, vector<80x16xbf16>
    %c0_37 = arith.constant 0 : index
    %c96 = arith.constant 96 : index
    %70 = vector.load %arg12[%c0_37, %c96] : memref<80x144xbf16, #tpu.memory_space<vmem>>, vector<80x16xbf16>
    tpu.vector_store %arg12[%c0_37, %c96], %69 {strides = array<i32>} : memref<80x144xbf16, #tpu.memory_space<vmem>>, vector<80x16xbf16>,
    %c21 = arith.constant 21 : index
    %c0_38 = arith.constant 0 : index
    %71 = vector.load %arg11[%c21, %c0_38] : memref<112x16xbf16, #tpu.memory_space<vmem>>, vector<80x16xbf16>
    %c0_39 = arith.constant 0 : index
    %c112 = arith.constant 112 : index
    %72 = vector.load %arg12[%c0_39, %c112] : memref<80x144xbf16, #tpu.memory_space<vmem>>, vector<80x16xbf16>
    tpu.vector_store %arg12[%c0_39, %c112], %71 {strides = array<i32>} : memref<80x144xbf16, #tpu.memory_space<vmem>>, vector<80x16xbf16>,
    %c22 = arith.constant 22 : index
    %c0_40 = arith.constant 0 : index
    %73 = vector.load %arg11[%c22, %c0_40] : memref<112x16xbf16, #tpu.memory_space<vmem>>, vector<80x16xbf16>
    %c0_41 = arith.constant 0 : index
    %c128 = arith.constant 128 : index
    %74 = vector.load %arg12[%c0_41, %c128] : memref<80x144xbf16, #tpu.memory_space<vmem>>, vector<80x16xbf16>
    tpu.vector_store %arg12[%c0_41, %c128], %73 {strides = array<i32>} : memref<80x144xbf16, #tpu.memory_space<vmem>>, vector<80x16xbf16>,
    %c0_42 = arith.constant 0 : index
    %c0_43 = arith.constant 0 : index
    %75 = vector.load %arg12[%c0_42, %c0_43] : memref<80x144xbf16, #tpu.memory_space<vmem>>, vector<80x144xbf16>
    %c0_44 = arith.constant 0 : index
    %c0_45 = arith.constant 0 : index
    %76 = vector.load %arg4[%c0_44, %c0_45] : memref<144x16xbf16, #tpu.memory_space<vmem>>, vector<144x16xbf16>
    %cst_46 = arith.constant dense<0.000000e+00> : vector<80x16xf32>
    %77 = tpu.matmul %75, %76, %cst_46 {dimension_numbers = #tpu.dot_dimension_numbers<[1], [0], [0], [1], [0, 0, 1, 1], [], []>} : vector<80x144xbf16>, vector<144x16xbf16>, vector<80x16xf32> -> vector<80x16xf32>
    %c0_47 = arith.constant 0 : index
    %c0_48 = arith.constant 0 : index
    %78 = vector.load %arg5[%c0_47, %c0_48] : memref<1x16xf32, #tpu.memory_space<vmem>>, vector<1x16xf32>
    %79 = vector.broadcast %78 : vector<1x16xf32> to vector<80x16xf32>
    %80 = arith.addf %77, %79 : vector<80x16xf32>
    %cst_49 = arith.constant 0.000000e+00 : f32
    %81 = vector.broadcast %cst_49 : f32 to vector<80x16xf32>
    %82 = arith.maximumf %80, %81 : vector<80x16xf32>
    %83 = arith.truncf %82 : vector<80x16xf32> to vector<80x16xbf16>
    %c0_50 = arith.constant 0 : index
    %c0_51 = arith.constant 0 : index
    %84 = vector.load %arg6[%c0_50, %c0_51] : memref<16x64xbf16, #tpu.memory_space<vmem>>, vector<16x64xbf16>
    %cst_52 = arith.constant dense<0.000000e+00> : vector<80x64xf32>
    %85 = tpu.matmul %83, %84, %cst_52 {dimension_numbers = #tpu.dot_dimension_numbers<[1], [0], [0], [1], [0, 0, 1, 1], [], []>} : vector<80x16xbf16>, vector<16x64xbf16>, vector<80x64xf32> -> vector<80x64xf32>
    %c0_53 = arith.constant 0 : index
    %c0_54 = arith.constant 0 : index
    %86 = vector.load %arg7[%c0_53, %c0_54] : memref<1x64xf32, #tpu.memory_space<vmem>>, vector<1x64xf32>
    %87 = vector.broadcast %86 : vector<1x64xf32> to vector<80x64xf32>
    %88 = arith.addf %85, %87 : vector<80x64xf32>
    %89 = vector.broadcast %39 : vector<80x1xf32> to vector<80x64xf32>
    %90 = arith.mulf %88, %89 : vector<80x64xf32>
    %cst_55 = arith.constant dense<0.000000e+00> : vector<64xf32>
    %91 = vector.multi_reduction <add>, %90, %cst_55 [0] : vector<80x64xf32> to vector<64xf32>
    %92 = vector.shape_cast %91 : vector<64xf32> to vector<1x64xf32>
    %cst_56 = arith.constant 1.562500e-02 : f32
    %93 = vector.broadcast %cst_56 : f32 to vector<1x64xf32>
    %94 = arith.mulf %92, %93 : vector<1x64xf32>
    %c0_57 = arith.constant 0 : index
    %c0_58 = arith.constant 0 : index
    %95 = vector.load %arg8[%c0_57, %c0_58] : memref<4x64xf32, #tpu.memory_space<vmem>>, vector<4x64xf32>
    %96 = vector.broadcast %94 : vector<1x64xf32> to vector<4x64xf32>
    %97 = arith.mulf %96, %95 : vector<4x64xf32>
    %cst_59 = arith.constant dense<0.000000e+00> : vector<4xf32>
    %98 = vector.multi_reduction <add>, %97, %cst_59 [1] : vector<4x64xf32> to vector<4xf32>
    %99 = vector.shape_cast %98 : vector<4xf32> to vector<4x1xf32>
    %cst_60 = arith.constant 0.000000e+00 : f32
    %100 = vector.broadcast %cst_60 : f32 to vector<4x1xf32>
    %101 = arith.maximumf %99, %100 : vector<4x1xf32>
    %c0_61 = arith.constant 0 : index
    %c0_62 = arith.constant 0 : index
    %102 = vector.load %arg9[%c0_61, %c0_62] : memref<4x64xf32, #tpu.memory_space<vmem>>, vector<4x64xf32>
    %103 = vector.broadcast %101 : vector<4x1xf32> to vector<4x64xf32>
    %104 = arith.mulf %103, %102 : vector<4x64xf32>
    %cst_63 = arith.constant dense<0.000000e+00> : vector<64xf32>
    %105 = vector.multi_reduction <add>, %104, %cst_63 [0] : vector<4x64xf32> to vector<64xf32>
    %106 = vector.shape_cast %105 : vector<64xf32> to vector<1x64xf32>
    %107 = arith.negf %106 : vector<1x64xf32>
    %108 = math.exp %107 : vector<1x64xf32>
    %cst_64 = arith.constant 1.000000e+00 : f32
    %109 = vector.broadcast %cst_64 : f32 to vector<1x64xf32>
    %110 = arith.addf %109, %108 : vector<1x64xf32>
    %111 = arith.divf %109, %110 : vector<1x64xf32>
    %112 = vector.broadcast %111 : vector<1x64xf32> to vector<80x64xf32>
    %113 = arith.mulf %88, %112 : vector<80x64xf32>
    %114 = arith.addf %113, %56 : vector<80x64xf32>
    %cst_65 = arith.constant 0.000000e+00 : f32
    %115 = vector.broadcast %cst_65 : f32 to vector<80x64xf32>
    %116 = arith.maximumf %114, %115 : vector<80x64xf32>
    %117 = arith.truncf %116 : vector<80x64xf32> to vector<80x64xbf16>
    %c0_66 = arith.constant 0 : index
    %c0_67 = arith.constant 0 : index
    %c0_68 = arith.constant 0 : index
    %118 = vector.load %arg10[%c0_66, %c0_67, %c0_68] : memref<1x80x64xbf16, #tpu.memory_space<vmem>>, vector<1x80x64xbf16>
    %119 = vector.shape_cast %118 : vector<1x80x64xbf16> to vector<80x64xbf16>
    %120 = vector.shape_cast %117 : vector<80x64xbf16> to vector<1x80x64xbf16>
    tpu.vector_store %arg10[%c0_66, %c0_67, %c0_68], %120 {strides = array<i32>} : memref<1x80x64xbf16, #tpu.memory_space<vmem>>, vector<1x80x64xbf16>,
    return
  }
  func.func @transform_0(%arg0: i32) -> (i32, i32, i32) {
    %c0_i32 = arith.constant 0 : i32
    %c0_i32_0 = arith.constant 0 : i32
    %c0_i32_1 = arith.constant 0 : i32
    return %arg0, %c0_i32, %c0_i32_0 : i32, i32, i32
  }
  func.func @transform_1(%arg0: i32) -> (i32, i32) {
    %c0_i32 = arith.constant 0 : i32
    %c0_i32_0 = arith.constant 0 : i32
    %c0_i32_1 = arith.constant 0 : i32
    return %c0_i32, %c0_i32_0 : i32, i32
  }
  func.func @transform_2(%arg0: i32) -> (i32, i32) {
    %c0_i32 = arith.constant 0 : i32
    %c0_i32_0 = arith.constant 0 : i32
    %c0_i32_1 = arith.constant 0 : i32
    return %c0_i32, %c0_i32_0 : i32, i32
  }
  func.func @transform_3(%arg0: i32) -> (i32, i32) {
    %c0_i32 = arith.constant 0 : i32
    %c0_i32_0 = arith.constant 0 : i32
    %c0_i32_1 = arith.constant 0 : i32
    return %c0_i32, %c0_i32_0 : i32, i32
  }
  func.func @transform_4(%arg0: i32) -> (i32, i32) {
    %c0_i32 = arith.constant 0 : i32
    %c0_i32_0 = arith.constant 0 : i32
    %c0_i32_1 = arith.constant 0 : i32
    return %c0_i32, %c0_i32_0 : i32, i32
  }
  func.func @transform_5(%arg0: i32) -> (i32, i32) {
    %c0_i32 = arith.constant 0 : i32
    %c0_i32_0 = arith.constant 0 : i32
    %c0_i32_1 = arith.constant 0 : i32
    return %c0_i32, %c0_i32_0 : i32, i32
  }
  func.func @transform_6(%arg0: i32) -> (i32, i32) {
    %c0_i32 = arith.constant 0 : i32
    %c0_i32_0 = arith.constant 0 : i32
    %c0_i32_1 = arith.constant 0 : i32
    return %c0_i32, %c0_i32_0 : i32, i32
  }
  func.func @transform_7(%arg0: i32) -> (i32, i32) {
    %c0_i32 = arith.constant 0 : i32
    %c0_i32_0 = arith.constant 0 : i32
    %c0_i32_1 = arith.constant 0 : i32
    return %c0_i32, %c0_i32_0 : i32, i32
  }
  func.func @transform_8(%arg0: i32) -> (i32, i32) {
    %c0_i32 = arith.constant 0 : i32
    %c0_i32_0 = arith.constant 0 : i32
    %c0_i32_1 = arith.constant 0 : i32
    return %c0_i32, %c0_i32_0 : i32, i32
  }
  func.func @transform_9(%arg0: i32) -> (i32, i32, i32) {
    %c0_i32 = arith.constant 0 : i32
    %c0_i32_0 = arith.constant 0 : i32
    %c0_i32_1 = arith.constant 0 : i32
    return %arg0, %c0_i32, %c0_i32_0 : i32, i32, i32
  }
}

</mosaic_0001>

<bundles_post_ra>
// kernel: tpu_custom_call.1
= control target key start
LH: loop header
LB: loop body
LE: loop exit
PB: predicated region body
PF: predicated region fallthrough
CT: control target
= control target key end

     0   :  { %s2814_s30 = smov 0   ;;  %s4352_s0 = inlined_call_operand.vmem [shape: bf16[2,112,32], index: 0, kind: input, shape index: {}]   ;;  %s4353_s1 = inlined_call_operand.vmem [shape: bf16[32,80], index: 1, kind: input, shape index: {}]   ;;  %s4354_s2 = inlined_call_operand.vmem [shape: f32[1,80], index: 2, kind: input, shape index: {}]   ;;  %s4355_s3 = inlined_call_operand.vmem [shape: bf16[144,16], index: 3, kind: input, shape index: {}]   ;;  %s4356_s4 = inlined_call_operand.vmem [shape: f32[1,16], index: 4, kind: input, shape index: {}]   ;;  %s4357_s5 = inlined_call_operand.vmem [shape: bf16[16,64], index: 5, kind: input, shape index: {}]   ;;  %s4358_s6 = inlined_call_operand.vmem [shape: f32[1,64], index: 6, kind: input, shape index: {}]   ;;  %s4359_s7 = inlined_call_operand.vmem [shape: f32[4,64], index: 7, kind: input, shape index: {}]   ;;  %s4360_s8 = inlined_call_operand.vmem [shape: f32[4,64], index: 8, kind: input, shape index: {}]   ;;  %s4361_s9 = inlined_call_operand.vmem [shape: bf16[2,80,64], index: 9, kind: output, shape index: {}]  }
   0x1 LB: > { %s2466_s10 = sadd.s32 4294967295, %s2752_s30   ;;  %p2470_p0 = scmp.ge.s32.totalorder %s2752_s30, 1  ;;  %s2752_s30 = sphi %s2814_s30, %s19_s30  }
   0x2   : > { %p287_p1 = scmp.lt.s32.totalorder %s2752_s30, 3 }
   0x4   : > { %p288_p2 = pnand %p2470_p0, %p287_p1 }
   0x6   : > { %291 = sbr.rel (%p288_p2) target bundleno = 1129 (0x469), region = 56 }
   0xb   : > { %v2709_v0 = vld [vmem:[%s4353_s1 + $0x8] sm:$0xff]   ;;  %v4364_v1 = vmov 0.0   ;;  %v2710_v2 = vld [vmem:[%s4353_s1] sm:$0xff]   ;;  %p323_p3 = scmp.lt.s32.totalorder %s2466_s10, 1  ;;  %vm4362_vm0 = vmmov 0   ;;  %vm667_vm1 = vcmask 261120   ;;  %v334_v10 = vlaneseq }
   0xc   : > { %2603 = vmatprep.subr.bf16.mxu0 %v4364_v1  ;;  %2657 = vmatprep.subr.bf16.mxu1 %v4364_v1  ;;  %s2756_s21 = smov 32   ;;  %s2757_s22 = smov 96  }
   0xd   : > { %2604 = vmatpush3.bf16.msra.mxu0 %v2709_v0  ;;  %2659 = vmatpush3.bf16.msra.mxu1 %v2709_v0  ;;  %s4617_s10 = smov (!%p323_p3, %s2466_s10), 1  ;;  %v2862_v11 = vshrl.u32 %v334_v10, 7  ;;  %s2758_s23 = smov 48  }
   0xe   : > { %2605 = vmatprep.subr.bf16.mxu0 %v4364_v1  ;;  %2658 = vmatprep.subr.bf16.mxu1 %v4364_v1  ;;  %s2661_s15 = smul.u32 56, %s4617_s10  ;;  %s2759_s24 = smov 80  }
   0xf   : > { %2607 = vmatprep.mubr.msk.bf16.mxu0 %vm4362_vm0, %v4364_v1  ;;  %2615 = vmatprep.mubr.msk.bf16.mxu1 %vm4362_vm0, %v4364_v1  ;;  %v339_v12 = vadd.s32 32, %v2862_v11  ;;  %v2866_v13 = vcvt.s32.f32 %v2862_v11  ;;  %v336_v15 = vadd.s32 8, %v2862_v11  ;;  %v340_v19 = vadd.s32 40, %v2862_v11  ;;  %s2760_s25 = smov 16   ;;  %s2761_s26 = smov 64  }
  0x10   : > { %s327_s18 = scalar_lea.vmem %s4352_s0, %s2661_s15  ;;  %v337_v20 = vadd.s32 16, %v2862_v11  ;;  %v341_v22 = vadd.s32 48, %v2862_v11  ;;  %v338_v26 = vadd.s32 24, %v2862_v11  ;;  %v342_v28 = vadd.s32 56, %v2862_v11  ;;  %s2762_s27 = smov 112  }
  0x11   : > { %2606 = vmatpush3.bf16.msra.mxu0 %v2710_v2  ;;  %2660 = vmatpush3.bf16.msra.mxu1 %v2710_v2  ;;  %v2711_v3 = vld [vmem:[%s327_s18] sm:$0xff]   ;;  %v2712_v4 = vld [vmem:[%s327_s18 + $0x10] sm:$0xff]   ;;  %v2713_v5 = vld [vmem:[%s327_s18 + $0x8] sm:$0xff]   ;;  %4408 = vst [vmem:[#allocation4_spill] sm:$0xff] %v2866_v13  ;;  %v2868_v14 = vcvt.s32.f32 %v339_v12  ;;  %v363_v16 = vadd.f32 0.5, %v2866_v13  ;;  %v2873_v18 = vcvt.s32.f32 %v336_v15  ;;  %v2879_v25 = vcvt.s32.f32 %v340_v19 }
  0x12   : > { %2635 = vmatprep.subr.bf16.mxu0 %v4364_v1  ;;  %v2714_v6 = vld [vmem:[%s327_s18 + $0x18] sm:$0xff]   ;;  %v2715_v7 = vld [vmem:[%s327_s18 + $0x20] sm:$0xff]   ;;  %v2716_v8 = vld [vmem:[%s327_s18 + $0x28] sm:$0xff]   ;;  %v2882_v27 = vcvt.s32.f32 %v337_v20  ;;  %v2885_v30 = vcvt.s32.f32 %v341_v22  ;;  %v2888_v34 = vcvt.s32.f32 %v338_v26  ;;  %v2891_v36 = vcvt.s32.f32 %v342_v28 }
  0x13   : > { %v2717_v9 = vld [vmem:[%s327_s18 + $0x30] sm:$0xff]   ;;  %4409 = vst [vmem:[#allocation5_spill] sm:$0xff] %v2868_v14  ;;  %v367_v17 = vadd.f32 0.5, %v2868_v14  ;;  %4410 = vst [vmem:[#allocation6_spill] sm:$0xff] %v2873_v18  ;;  %v377_v21 = vmul.f32 0.1, %v363_v16 }
  0x14   : > { %2608 = vmatmul.mubr.msk.bf16.vlgmr.msra.gmra.mxu0 %vm667_vm1, %v2711_v3  ;;  %2616 = vmatmul.mubr.msk.bf16.vlgmr.msra.gmra.mxu1 %vm667_vm1, %v2712_v4  ;;  %v364_v24 = vadd.f32 0.5, %v2873_v18  ;;  %4411 = vst [vmem:[#allocation7_spill] sm:$0xff] %v2879_v25  ;;  %4412 = vst [vmem:[#allocation8_spill] sm:$0xff] %v2882_v27  ;;  %v368_v33 = vadd.f32 0.5, %v2879_v25  ;;  %v365_v35 = vadd.f32 0.5, %v2882_v27  ;;  %v369_v38 = vadd.f32 0.5, %v2885_v30 }
  0x15   : > { %2611 = vmatprep.mubr.msk.bf16.mxu0 %vm4362_vm0, %v4364_v1  ;;  %2619 = vmatprep.mubr.msk.bf16.mxu1 %vm4362_vm0, %v4364_v1  ;;  %v381_v23 = vmul.f32 0.1, %v367_v17  ;;  %v2663_v29 = vtrunc.f32 %v377_v21  ;;  %4413 = vst [vmem:[#allocation9_spill] sm:$0xff] %v2885_v30  ;;  %4414 = vst [vmem:[#allocation10_spill] sm:$0xff] %v2888_v34  ;;  %v343_v39 = vadd.s32 64, %v2862_v11  ;;  %v366_v43 = vadd.f32 0.5, %v2888_v34 }
  0x16   : > { %v378_v32 = vmul.f32 0.1, %v364_v24  ;;  %4415 = vst [vmem:[#allocation11_spill] sm:$0xff] %v2891_v36  ;;  %v382_v42 = vmul.f32 0.1, %v368_v33  ;;  %v370_v45 = vadd.f32 0.5, %v2891_v36 }
  0x17   : > { %v2671_v31 = vtrunc.f32 %v381_v23  ;;  %v2664_v37 = vcvt.f32.s32 %v2663_v29  ;;  %v379_v44 = vmul.f32 0.1, %v365_v35  ;;  %v383_v47 = vmul.f32 0.1, %v369_v38 }
  0x18   : > { %v2665_v41 = vtrunc.f32 %v378_v32  ;;  %v2897_v48 = vcvt.s32.f32 %v343_v39  ;;  %v2673_v51 = vtrunc.f32 %v382_v42  ;;  %v380_v52 = vmul.f32 0.1, %v366_v43  ;;  %v2940_v32 = vld [vmem:[%s4354_s2] ss:$0 sm:$0xff] }
  0x19   : > { %v2672_v40 = vcvt.f32.s32 %v2671_v31  ;;  %v405_v46 = vcvt.s32.f32 %v2664_v37  ;;  %v2667_v53 = vtrunc.f32 %v379_v44  ;;  %v384_v54 = vmul.f32 0.1, %v370_v45 }
  0x1a   : > { %4416 = vst [vmem:[#allocation12_spill] sm:$0xff] %v2897_v48  ;;  %v2666_v50 = vcvt.f32.s32 %v2665_v41  ;;  %v2675_v56 = vtrunc.f32 %v383_v47  ;;  %v371_v57 = vadd.f32 0.5, %v2897_v48  ;;  %v2674_v60 = vcvt.f32.s32 %v2673_v51 }
  0x1b   : > { %v409_v49 = vcvt.s32.f32 %v2672_v40  ;;  %v419_v55 = vmul.f32 10.0, %v405_v46  ;;  %v2669_v61 = vtrunc.f32 %v380_v52  ;;  %v2668_v62 = vcvt.f32.s32 %v2667_v53 }
  0x1c   : > { %2612 = vmatmul.mubr.msk.bf16.gmra.mxu0 %vm667_vm1, %v2713_v5  ;;  %2620 = vmatmul.mubr.msk.bf16.gmra.mxu1 %vm667_vm1, %v2714_v6  ;;  %v406_v59 = vcvt.s32.f32 %v2666_v50  ;;  %vm447_vm2 = vcmp.ge.f32.partialorder %v405_v46, 1.0  ;;  %v2677_v63 = vtrunc.f32 %v384_v54  ;;  %vm461_vm3 = vcmp.le.f32.partialorder %v405_v46, 8.0 }
  0x1d   : > { %2637 = vmatprep.mubr.msk.bf16.mxu0 %vm4362_vm0, %v4364_v1  ;;  %2623 = vmatprep.mubr.msk.bf16.mxu1 %vm4362_vm0, %v4364_v1  ;;  %v423_v58 = vmul.f32 10.0, %v409_v49  ;;  %v2901_v0 = vsub.f32 %v2866_v13, %v419_v55  ;;  %v2676_v2 = vcvt.f32.s32 %v2675_v56  ;;  %v385_v3 = vmul.f32 0.1, %v371_v57  ;;  %vm475_vm6 = vmand %vm447_vm2, %vm461_vm3 }
  0x1e   : > { %v420_v5 = vmul.f32 10.0, %v406_v59  ;;  %v410_v6 = vcvt.s32.f32 %v2674_v60  ;;  %vm451_vm4 = vcmp.ge.f32.partialorder %v409_v49, 1.0  ;;  %vm465_vm5 = vcmp.le.f32.partialorder %v409_v49, 8.0 }
  0x1f   : > { %4417 = vst [vmem:[#allocation13_spill] sm:$0xff] %v2901_v0  ;;  %v2904_v4 = vsub.f32 %v2868_v14, %v423_v58  ;;  %vm489_vm7 = vcmp.ge.f32.partialorder %v2901_v0, 1.0  ;;  %v2907_v10 = vcvt.s32.f32 %v2676_v2  ;;  %v2679_v12 = vtrunc.f32 %v385_v3  ;;  %vm479_vm8 = vmand %vm451_vm4, %vm465_vm5 }
  0x20   : > { %v2911_v15 = vsub.f32 %v2873_v18, %v420_v5  ;;  %v424_v16 = vmul.f32 10.0, %v410_v6  ;;  %vm448_vm10 = vcmp.ge.f32.partialorder %v406_v59, 1.0  ;;  %vm462_vm11 = vcmp.le.f32.partialorder %v406_v59, 8.0  ;;  %vm503_vm12 = vmand %vm475_vm6, %vm489_vm7 }
  0x21   : > { %4418 = vst [vmem:[#allocation14_spill] sm:$0xff] %v2904_v4  ;;  %vm493_vm9 = vcmp.ge.f32.partialorder %v2904_v4, 1.0  ;;  %vm517_vm13 = vcmp.le.f32.partialorder %v2901_v0, 8.0  ;;  %vm521_vm15 = vcmp.le.f32.partialorder %v2904_v4, 8.0  ;;  %v425_v21 = vmul.f32 10.0, %v2907_v10 }
  0x22   : > { %4419 = vst [vmem:[#allocation15_spill] sm:$0xff] %v2911_v15  ;;  %vm507_vm14 = vmand %vm479_vm8, %vm493_vm9  ;;  %v2680_v22 = vcvt.f32.s32 %v2679_v12  ;;  %vm490_vm2 = vcmp.ge.f32.partialorder %v2911_v15, 1.0  ;;  %v2922_v23 = vsub.f32 %v2879_v25, %v424_v16  ;;  %vm452_vm4 = vcmp.ge.f32.partialorder %v410_v6, 1.0 }
  0x23   : > { %vm2925_vm3 = vmand %vm503_vm12, %vm517_vm13  ;;  %vm466_vm5 = vcmp.le.f32.partialorder %v410_v6, 8.0  ;;  %v2948_v35 = vsub.f32 %v2885_v30, %v425_v21  ;;  %v344_v46 = vadd.s32 72, %v2862_v11  ;;  %v3083_v38 = vadd.s32 80, %v2862_v11 }
  0x24   : > { %2624 = vmatmul.mubr.msk.bf16.gmra.mxu1 %vm667_vm1, %v2715_v7  ;;  %v2670_v7 = vcvt.f32.s32 %v2669_v61  ;;  %4420 = vst [vmem:[#allocation16_spill] sm:$0xff] %v2922_v23  ;;  %vm2932_vm6 = vmand %vm507_vm14, %vm521_vm15  ;;  %v2950_v37 = vcvt.s32.f32 %v2680_v22  ;;  %vm494_vm13 = vcmp.ge.f32.partialorder %v2922_v23, 1.0  ;;  %vm522_vm14 = vcmp.le.f32.partialorder %v2922_v23, 8.0 }
  0x25   : > { %2627 = vmatprep.mubr.msk.bf16.mxu1 %vm4362_vm0, %v4364_v1  ;;  %4428 = vst [vmem:[#allocation18_spill] sm:$0xff] %v2948_v35  ;;  %vm2952_vm12 = vmand %vm452_vm4, %vm466_vm5  ;;  %vm467_vm4 = vcmp.le.f32.partialorder %v2907_v10, 8.0 }
  0x26   : > { %v2913_v17 = vcvt.s32.f32 %v2670_v7  ;;  %v427_v51 = vmul.f32 10.0, %v2950_v37 }
  0x28   : > { %v422_v24 = vmul.f32 10.0, %v2913_v17  ;;  %v3045_v7 = vsub.f32 %v2897_v48, %v427_v51 }
  0x2a   : > { %v2958_v39 = vsub.f32 %v2888_v34, %v422_v24  ;;  %4448 = vst [vmem:[#allocation22_spill] sm:$0xff] %v3045_v7  ;;  %v4370_v24 = vcvt.s32.f32 %v3083_v38 }
  0x2c   : > { %2628 = vmatmul.mubr.msk.bf16.gmra.mxu1 %vm667_vm1, %v2716_v8  ;;  %v407_v8 = vcvt.s32.f32 %v2668_v62  ;;  %4431 = vst [vmem:[#allocation19_spill] sm:$0xff] %v2958_v39  ;;  %v3031_v62 = vcvt.s32.f32 %v344_v46 }
  0x2d   : > { %2631 = vmatprep.mubr.msk.bf16.mxu1 %vm4362_vm0, %v4364_v1 }
  0x2e   : > { %v421_v19 = vmul.f32 10.0, %v407_v8  ;;  %vm449_vm7 = vcmp.ge.f32.partialorder %v407_v8, 1.0  ;;  %vm463_vm8 = vcmp.le.f32.partialorder %v407_v8, 8.0  ;;  %4445 = vst [vmem:[#allocation21_spill] sm:$0xff] %v3031_v62  ;;  %v372_v33 = vadd.f32 0.5, %v3031_v62 }
  0x2f   : > { %vm2961_vm15 = vmand %vm449_vm7, %vm463_vm8 }
  0x30   : > { %v2930_v28 = vsub.f32 %v2882_v27, %v421_v19  ;;  %vm2989_vm8 = vmand %vm2952_vm12, %vm494_vm13  ;;  %vm464_vm13 = vcmp.le.f32.partialorder %v2913_v17, 8.0 }
  0x32   : > { %4423 = vst [vmem:[#allocation17_spill] sm:$0xff] %v2930_v28  ;;  %vm519_vm7 = vcmp.le.f32.partialorder %v2930_v28, 8.0 }
  0x34   : > { %2632 = vmatmul.mubr.msk.bf16.gmra.mxu1 %vm667_vm1, %v2717_v9  ;;  %v2678_v9 = vcvt.f32.s32 %v2677_v63  ;;  %vm476_vm1 = vmand %vm448_vm10, %vm462_vm11  ;;  %vm518_vm10 = vcmp.le.f32.partialorder %v2911_v15, 8.0 }
  0x35   : > { %vm2942_vm9 = vmand %vm476_vm1, %vm490_vm2  ;;  %vm491_vm1 = vcmp.ge.f32.partialorder %v2930_v28, 1.0  ;;  %vm453_vm2 = vcmp.ge.f32.partialorder %v2907_v10, 1.0 }
  0x36   : > { %v2916_v20 = vcvt.s32.f32 %v2678_v9  ;;  %vm2973_vm5 = vmand %vm2942_vm9, %vm518_vm10  ;;  %vm495_vm9 = vcmp.ge.f32.partialorder %v2948_v35, 1.0 }
  0x37   : > { %vm3000_vm0 = vmand %vm2961_vm15, %vm491_vm1 }
  0x38   : > { %v426_v31 = vmul.f32 10.0, %v2916_v20  ;;  %vm3012_vm10 = vmand %vm453_vm2, %vm467_vm4  ;;  %vm454_vm1 = vcmp.ge.f32.partialorder %v2916_v20, 1.0  ;;  %vm468_vm12 = vcmp.le.f32.partialorder %v2916_v20, 8.0  ;;  %vm2289_vm4 = vcmask 1044480  }
  0x39   : > { %vm3026_vm11 = vmand %vm2989_vm8, %vm522_vm14  ;;  %vm1106_vm14 = vcmask 1042432   ;;  %vm4452_vm8 = vcmp.ge.f32.partialorder %v2913_v17, 1.0 }
  0x3a   : > { %v2979_v45 = vsub.f32 %v2891_v36, %v426_v31  ;;  %vm3062_vm15 = vmand %vm4452_vm8, %vm464_vm13  ;;  %vm1460_vm13 = vcmask 1041408  }
  0x3c   : > { %4436 = vst [vmem:[#allocation20_spill] sm:$0xff] %v2979_v45  ;;  %vm496_vm2 = vcmp.ge.f32.partialorder %v2979_v45, 1.0 }
  0xd4   : > { %v723_v40 = vpop.f32.mrf.mxu0  ;;  %v739_v43 = vpop.f32.mrf.mxu1 }
  0xd5   : > { %v724_v42 = vadd.f32 %v2940_v32, %v723_v40  ;;  %v2983_v47 = vadd.f32 %v2940_v32, %v739_v43 }
  0xd6   : > { %v2609_v49 = vpop.f32.mrf.mxu0  ;;  %v2617_v53 = vpop.f32.mrf.mxu1 }
  0xd7   : > { %v778_v52 = vmax.f32 %v724_v42, 0.0  ;;  %v782_v55 = vmax.f32 %v2983_v47, 0.0  ;;  %v4368_v16 = vrot.slane %v2983_v47, 3 }
  0xd8   : > { %v726_v56 = vpop.f32.mrf.mxu0  ;;  %v742_v61 = vpop.f32.mrf.mxu1 }
  0xd9   : > { %v820_v58 = vsel %vm2925_vm3, %v778_v52, 0.0  ;;  %v727_v59 = vadd.f32 %v2940_v32, %v726_v56  ;;  %v824_v2 = vsel %vm2932_vm6, %v782_v55, 0.0  ;;  %v743_v3 = vadd.f32 %v2940_v32, %v742_v61  ;;  %vm3040_vm3 = vmand %vm3000_vm0, %vm519_vm7 }
  0xda   : > { %v2564_v63 = vpack.c.bf16 %v820_v58, %v820_v58  ;;  %v2610_v5 = vpop.f32.mrf.mxu0  ;;  %v2568_v8 = vpack.c.bf16 %v824_v2, %v824_v2  ;;  %v2618_v10 = vpop.f32.mrf.mxu1  ;;  %vm3051_vm6 = vmand %vm3012_vm10, %vm495_vm9  ;;  %vm455_vm0 = vcmp.ge.f32.partialorder %v2950_v37, 1.0  ;;  %vm4451_vm7 = vcmask 125952  }
  0xdb   : > { %v779_v9 = vmax.f32 %v727_v59, 0.0  ;;  %v783_v19 = vmax.f32 %v743_v3, 0.0  ;;  %v2297_v21 = vrot.slane %v743_v3, 3  ;;  %vm469_vm9 = vcmp.le.f32.partialorder %v2950_v37, 8.0  ;;  %vm4455_vm10 = vmmov %vm4451_vm7 }
  0xdc   : > { %891 = vst.msk [vmem:[#allocation2] sm:$0xf] %vm4451_vm7, %v2564_v63  ;;  %v731_v22 = vpop.f32.mrf.mxu0  ;;  %v747_v31 = vpop.f32.mrf.mxu1  ;;  %vm3077_vm7 = vmand %vm454_vm1, %vm468_vm12  ;;  %v2290_v46 = vrot.slane %v727_v59, 3  ;;  %v3140_v63 = vmul.f32 0.1, %v372_v33 }
  0xdd   : > { %895 = vst.msk [vmem:[#allocation2 + $0x10] sm:$0xf] %vm4455_vm10, %v2568_v8  ;;  %v821_v26 = vsel %vm2973_vm5, %v779_v9, 0.0  ;;  %v3071_v29 = vadd.f32 %v2940_v32, %v731_v22  ;;  %v825_v41 = vsel %vm3026_vm11, %v783_v19, 0.0  ;;  %vm4458_vm5 = vcmp.le.f32.partialorder %v2948_v35, 8.0  ;;  %vm4465_vm1 = vmmov %vm4455_vm10 }
  0xde   : > { %v2565_v40 = vpack.c.bf16 %v821_v26, %v821_v26  ;;  %vm3091_vm8 = vmand %vm3051_vm6, %vm4458_vm5  ;;  %v3096_v42 = vadd.f32 %v2940_v32, %v747_v31  ;;  %v2613_v43 = vpop.f32.mrf.mxu0  ;;  %v3101_v44 = vsel %vm2289_vm4, %v4368_v16, %v2297_v21  ;;  %v2569_v49 = vpack.c.bf16 %v825_v41, %v825_v41  ;;  %v2621_v53 = vpop.f32.mrf.mxu1 }
  0xdf   : > { %4461 = vst [vmem:[#allocation23_spill] sm:$0xff] %v3101_v44  ;;  %v780_v50 = vmax.f32 %v3071_v29, 0.0  ;;  %v2291_v51 = vrot.slane %v3071_v29, 3  ;;  %vm4462_vm11 = vcmp.ge.f32.partialorder %v2958_v39, 1.0  ;;  %vm3120_vm6 = vmand %vm3077_vm7, %vm496_vm2  ;;  %vm497_vm10 = vcmp.ge.f32.partialorder %v3045_v7, 1.0 }
  0xe0   : > { %vm3109_vm12 = vmand %vm3062_vm15, %vm4462_vm11  ;;  %892 = vst.msk [vmem:[#allocation2 + $0x4] sm:$0xf] %vm4465_vm1, %v2565_v40  ;;  %v784_v54 = vmax.f32 %v3096_v42, 0.0  ;;  %v4366_v55 = vrot.slane %v3096_v42, 3  ;;  %v734_v56 = vpop.f32.mrf.mxu0  ;;  %vm524_vm15 = vcmp.le.f32.partialorder %v2979_v45, 8.0  ;;  %v750_v60 = vpop.f32.mrf.mxu1  ;;  %v2681_v43 = vtrunc.f32 %v3140_v63 }
  0xe1   : > { %vm4468_vm5 = vmmov %vm4465_vm1  ;;  %v822_v58 = vsel %vm3040_vm3, %v780_v50, 0.0  ;;  %v3130_v59 = vadd.f32 %v2940_v32, %v734_v56  ;;  %v3145_v2 = vsel %vm2289_vm4, %v2290_v46, %v2291_v51  ;;  %vm4471_vm3 = vcmp.le.f32.partialorder %v2958_v39, 8.0 }
  0xe2   : > { %896 = vst.msk [vmem:[#allocation2 + $0x14] sm:$0xf] %vm4468_vm5, %v2569_v49  ;;  %vm3136_vm2 = vmand %vm455_vm0, %vm469_vm9  ;;  %v2566_v3 = vpack.c.bf16 %v822_v58, %v822_v58  ;;  %v826_v5 = vsel %vm3091_vm8, %v784_v54, 0.0  ;;  %v2614_v6 = vpop.f32.mrf.mxu0  ;;  %v3158_v8 = vadd.f32 %v2940_v32, %v750_v60  ;;  %v3163_v9 = vsel %vm2289_vm4, %v2297_v21, %v4366_v55  ;;  %v2622_v22 = vpop.f32.mrf.mxu1 }
  0xe3   : > { %vm3153_vm7 = vmand %vm3109_vm12, %vm4471_vm3  ;;  %4474 = vst [vmem:[#allocation24_spill] sm:$0xff] %v3163_v9  ;;  %v2570_v10 = vpack.c.bf16 %v826_v5, %v826_v5  ;;  %v781_v12 = vmax.f32 %v3130_v59, 0.0  ;;  %vm1107_vm9 = vcmask 1046532   ;;  %v1084_v31 = vld [vmem:[#allocation2] sm:$0xe]  ;;  %vm525_vm12 = vcmp.le.f32.partialorder %v3045_v7, 8.0 }
  0xe4   : > { %vm3170_vm0 = vmand %vm3120_vm6, %vm524_vm15  ;;  %v785_v21 = vmax.f32 %v3158_v8, 0.0  ;;  %v3177_v26 = vld [vmem:[#allocation2 + $0x10] sm:$0xf]  ;;  %vm1461_vm6 = vcmask 1045508   ;;  %v755_v41 = vpop.f32.mrf.mxu1  ;;  %v4367_v49 = vrot.slane %v3130_v59, 3  ;;  %v2514_v58 = vrot.slane %v1084_v31, 9 }
  0xe5   : > { %vm4477_vm8 = vmmov %vm4465_vm1  ;;  %897 = vst.msk [vmem:[#allocation2 + $0x18] sm:$0xf] %vm4465_vm1, %v2570_v10  ;;  %v823_v33 = vsel %vm3153_vm7, %v781_v12, 0.0  ;;  %v4369_v40 = vrot.slane %v3177_v26, 6  ;;  %v3192_v20 = vld [vmem:[#allocation2 + $0x10] sm:$0xf]  ;;  %v3205_v53 = vadd.f32 %v2940_v32, %v755_v41 }
  0xe6   : > { %893 = vst.msk [vmem:[#allocation2 + $0x8] sm:$0xf] %vm4477_vm8, %v2566_v3  ;;  %vm3183_vm11 = vmand %vm3136_vm2, %vm497_vm10  ;;  %v2567_v46 = vpack.c.bf16 %v823_v33, %v823_v33  ;;  %v827_v50 = vsel %vm3170_vm0, %v785_v21, 0.0  ;;  %v3207_v54 = vld [vmem:[#allocation2 + $0x10] sm:$0xf]  ;;  %v4372_v61 = vrot.slane %v3192_v20, 5  ;;  %v2625_v63 = vpop.f32.mrf.mxu1  ;;  %v3239_v19 = vsel %vm2289_vm4, %v2291_v51, %v4367_v49 }
  0xe7   : > { %vm3200_vm15 = vmor %vm1106_vm14, %vm1107_vm9  ;;  %v2571_v56 = vpack.c.bf16 %v827_v50, %v827_v50  ;;  %v3209_v57 = vld [vmem:[#allocation2 + $0x4] sm:$0xf]  ;;  %vm936_vm14 = vsmask.f32 3328  ;;  %vm937_vm5 = vsmask.f32 7440 }
  0xe8   : > { %vm3215_vm10 = vmand %vm3183_vm11, %vm525_vm12  ;;  %v373_v3 = vadd.f32 0.5, %v4370_v24  ;;  %v4374_v6 = vrot.slane %v3209_v57, 5  ;;  %v786_v10 = vmax.f32 %v3205_v53, 0.0  ;;  %v4371_v12 = vrot.slane %v3207_v54, 5  ;;  %v3247_v17 = vld [vmem:[#allocation2 + $0x10] sm:$0xf]  ;;  %v3249_v33 = vpop.f32.mrf.mxu1 }
  0xe9   : > { %vm4484_vm2 = vmmov %vm4465_vm1  ;;  %v3229_v37 = vld [vmem:[#allocation2 + $0x14] sm:$0xf]  ;;  %v1564_v22 = vrot.slane %v4369_v40, 4  ;;  %v3260_v50 = vadd.s32 88, %v2862_v11  ;;  %vm1286_vm9 = vsmask.f32 2304 }
  0xea   : > { %894 = vst.msk [vmem:[#allocation2 + $0xc] sm:$0xf] %vm4484_vm2, %v2567_v46  ;;  %vm3225_vm3 = vmor %vm1460_vm13, %vm1461_vm6  ;;  %v4373_v21 = vrot.slane %v3229_v37, 6  ;;  %v3245_v31 = vld [vmem:[#allocation2 + $0x14] sm:$0xf]  ;;  %v1112_v29 = vsel %vm3200_vm15, %v2514_v58, %v4374_v6  ;;  %v828_v51 = vsel %vm3215_vm10, %v786_v10, 0.0  ;;  %v2626_v1 = vpop.f32.mrf.mxu1 }
  0xeb   : > { %vm4487_vm7 = vmmov %vm4465_vm1  ;;  %v3257_v41 = vld [vmem:[#allocation2 + $0x14] sm:$0xf]  ;;  %v925_v46 = vld [vmem:[#allocation2] sm:$0xf]  ;;  %1140 = vrot.lane.b32.xlu1 %v1112_v29, %s2756_s21  ;;  %v2572_v63 = vpack.c.bf16 %v828_v51, %v828_v51  ;;  %v4379_v58 = vrot.slane %v3245_v31, 5  ;;  %v1213_v55 = vrot.slane %v4371_v12, 4 }
  0xec   : > { %898 = vst.msk [vmem:[#allocation2 + $0x1c] sm:$0xf] %vm4487_vm7, %v2571_v56  ;;  %v1566_v56 = vsel %vm3225_vm3, %v1564_v22, %v4373_v21  ;;  %v4375_v60 = vrot.slane %v3257_v41, 5  ;;  %v3269_v10 = vld [vmem:[#allocation2 + $0x14] sm:$0xf]  ;;  %v2682_v22 = vcvt.f32.s32 %v2681_v43  ;;  %vm4488_vm13 = vmmov %vm4465_vm1  ;;  %v1122_v29 = vrot.slane %v4372_v61, 4  ;;  %v3280_v1 = vpop.f32.mrf.mxu1 }
  0xed   : > { %1592 = vrot.lane.b32.xlu0 %v1566_v56, %s2757_s22  ;;  %v387_v16 = vmul.f32 0.1, %v373_v3  ;;  %899 = vst.msk [vmem:[#allocation2 + $0x20] sm:$0xf] %vm4488_vm13, %v2572_v63  ;;  %v3278_v51 = vld [vmem:[#allocation2 + $0x4] sm:$0xf]  ;;  %vm3315_vm0 = vmor %vm936_vm14, %vm937_vm5 }
  0xee   : > { %v940_v40 = vshrl.u32 %v925_v46, 16  ;;  %v943_v24 = vshll.u32 %v925_v46, 16  ;;  %v1215_v56 = vsel %vm3200_vm15, %v1213_v55, %v4375_v60  ;;  %v949_v43 = vshll.u32 %v3278_v51, 16  ;;  %v929_v3 = vld [vmem:[#allocation2 + $0x10] sm:$0xf]  ;;  %v2629_v49 = vpop.f32.mrf.mxu1 }
  0xef   : > { %v1124_v61 = vsel %vm3200_vm15, %v1122_v29, %v4379_v58  ;;  %1240 = vrot.lane.b32.xlu1 %v1215_v56, %s2758_s23  ;;  %v979_v6 = vshll.u32 %v929_v3, 16  ;;  %v4489_v55 = vrot.slane %v3247_v17, 6  ;;  %v3297_v12 = vld [vmem:[#allocation2 + $0x14] sm:$0xf]  ;;  %v3299_v63 = vcvt.s32.f32 %v2682_v22  ;;  %v1278_v58 = vld [vmem:[#allocation2 + $0x10] sm:$0xf] }
  0xf0   : > { %v942_v46 = vrot.slane %v940_v40, 4  ;;  %v945_v21 = vrot.slane %v943_v24, 5  ;;  %v2683_v48 = vtrunc.f32 %v387_v16  ;;  %v3301_v36 = vrot.slane %v949_v43, 5  ;;  %v3305_v40 = vld [vmem:[#allocation2 + $0x8] sm:$0xf]  ;;  %v3307_v24 = vpop.f32.mrf.mxu1 }
  0xf1   : > { %1148 = vrot.lane.b32.xlu0 %v1124_v61, %s2756_s21  ;;  %v1473_v60 = vrot.slane %v4489_v55, 4  ;;  %v3303_v29 = vrot.slane %v979_v6, 5  ;;  %v983_v56 = vshrl.u32 %v929_v3, 16  ;;  %v4490_v49 = vrot.slane %v3269_v10, 6 }
  0xf2   : > { %v946_v7 = vor.u32 %v945_v21, %v942_v46  ;;  %v989_v16 = vshll.u32 %v3297_v12, 16  ;;  %vm1287_vm8 = vsmask.f32 6416  ;;  %v4493_v3 = vcvt.s32.f32 %v3260_v50  ;;  %v2630_v46 = vpop.f32.mrf.mxu1 }
  0xf3   : > { %v1475_v61 = vsel %vm3225_vm3, %v1473_v60, %v4490_v49  ;;  %v985_v43 = vrot.slane %v983_v56, 4  ;;  %v4494_v55 = vrot.slane %v3209_v57, 5  ;;  %v428_v45 = vmul.f32 10.0, %v3299_v63  ;;  %v3343_v57 = vld [vmem:[#allocation2 + $0x8] sm:$0xf]  ;;  %vm3366_vm6 = vmor %vm1286_vm9, %vm1287_vm8 }
  0xf4   : > { %1500 = vrot.lane.b32.xlu1 %v1475_v61, %s2759_s24  ;;  %v947_v21 = vrot.slane %v946_v7, 4  ;;  %v374_v60 = vadd.f32 0.5, %v4493_v3  ;;  %v2684_v30 = vcvt.f32.s32 %v2683_v48  ;;  %v3328_v6 = vadd.s32 96, %v2862_v11  ;;  %v1279_v3 = vld [vmem:[#allocation2 + $0x14] sm:$0xf]  ;;  %v3336_v35 = vpop.f32.mrf.mxu1 }
  0xf5   : > { %v1113_v49 = vrot.slane %v4494_v55, 4  ;;  %v986_v56 = vor.u32 %v985_v43, %v3303_v29  ;;  %v3334_v61 = vrot.slane %v989_v16, 5  ;;  %v1319_v46 = vshrl.u32 %v1278_v58, 16  ;;  %v1181_v43 = vld [vmem:[#allocation2 + $0x4] sm:$0xe] }
  0xf6   : > { %v952_v7 = vsel %vm3315_vm0, %v947_v21, %v3301_v36  ;;  %v4495_v48 = vrot.slane %v3305_v40, 5  ;;  %v1322_v55 = vshll.u32 %v1278_v58, 16  ;;  %v1329_v21 = vshrl.u32 %v1279_v3, 16  ;;  %v2633_v14 = vpop.f32.mrf.mxu1 }
  0xf7   : > { %1043 = vrot.lane.b32.xlu0 %v952_v7, %s2760_s25  ;;  %v1332_v25 = vshll.u32 %v1279_v3, 16  ;;  %vm1640_vm11 = vsmask.f32 1280  ;;  %vm1641_vm12 = vsmask.f32 5392  ;;  %v987_v16 = vrot.slane %v986_v56, 4 }
  0xf8   : > { %v1115_v11 = vsel %vm3200_vm15, %v1113_v49, %v4495_v48  ;;  %v1321_v23 = vrot.slane %v1319_v46, 5  ;;  %vm456_vm1 = vcmp.ge.f32.partialorder %v3299_v63, 1.0  ;;  %v3347_v7 = vmul.f32 0.1, %v374_v60  ;;  %v1631_v48 = vld [vmem:[#allocation2 + $0x10] sm:$0xf]  ;;  %v774_v27 = vpop.f32.mrf.mxu1  ;;  %vm3408_vm5 = vmor %vm1640_vm11, %vm1641_vm12 }
  0xf9   : > { %1142 = vrot.lane.b32.xlu1 %v1115_v11, %s2756_s21  ;;  %v1324_v4 = vrot.slane %v1322_v55, 6  ;;  %v1331_v34 = vrot.slane %v1329_v21, 5  ;;  %v1334_v49 = vrot.slane %v1332_v25, 6  ;;  %v3349_v39 = vcvt.s32.f32 %v2684_v30  ;;  %v1632_v3 = vld [vmem:[#allocation2 + $0x14] sm:$0xf] }
  0xfa   : > { %v992_v58 = vsel %vm3315_vm0, %v987_v16, %v3334_v61  ;;  %v1663_v11 = vshrl.u32 %v1631_v48, 16  ;;  %v993_v60 = vshrl.u32 %v3297_v12, 16  ;;  %v3362_v30 = vld [vmem:[#allocation2 + $0x8] sm:$0xf]  ;;  %v1666_v55 = vshll.u32 %v1631_v48, 16 }
  0xfb   : > { %1051 = vrot.lane.b32.xlu0 %v992_v58, %s2760_s25  ;;  %v3358_v14 = vor.u32 %v1324_v4, %v1321_v23  ;;  %v3360_v25 = vor.u32 %v1334_v49, %v1331_v34  ;;  %v2515_v21 = vrot.slane %v1181_v43, 9  ;;  %v3370_v46 = vld [vmem:[#allocation2 + $0x18] sm:$0xf]  ;;  %v1673_v12 = vshrl.u32 %v1632_v3, 16  ;;  %v2634_v58 = vpop.f32.mrf.mxu1  ;;  %v1438_v34 = vld [vmem:[#allocation2 + $0x4] sm:$0xc] }
  0xfc   : > { %v1665_v27 = vrot.slane %v1663_v11, 6  ;;  %v1676_v56 = vshll.u32 %v1632_v3, 16  ;;  %v1668_v23 = vrot.slane %v1666_v55, 7  ;;  %v3374_v49 = vsub.f32 %v3031_v62, %v428_v45 }
  0xfd   : > { %v1327_v4 = vrot.slane %v3358_v14, 4  ;;  %v429_v43 = vmul.f32 10.0, %v3349_v39  ;;  %v4499_v48 = vrot.slane %v3343_v57, 5  ;;  %v1675_v11 = vrot.slane %v1673_v12, 6 }
  0xfe   : > { %4498 = vst [vmem:[#allocation25_spill] sm:$0xff] %v3374_v49  ;;  %v1678_v0 = vrot.slane %v1676_v56, 7  ;;  %v995_v55 = vrot.slane %v993_v60, 4  ;;  %vm470_vm10 = vcmp.le.f32.partialorder %v3299_v63, 8.0  ;;  %v2516_v58 = vrot.slane %v1438_v34, 10 }
  0xff   : > { %v1206_v28 = vsel %vm3200_vm15, %v2515_v21, %v4499_v48  ;;  %v1336_v3 = vsel %vm3366_vm6, %v1327_v4, %v3360_v25  ;;  %v3389_v21 = vor.u32 %v1668_v23, %v1665_v27  ;;  %v3391_v48 = vld [vmem:[#allocation2 + $0x18] sm:$0xf]  ;;  %v4500_v12 = vcvt.s32.f32 %v3328_v6  ;;  %vm484_vm7 = vmand %vm456_vm1, %vm470_vm10 }
 0x100   : > { %1234 = vrot.lane.b32.xlu0 %v1206_v28, %s2758_s23  ;;  %1403 = vrot.lane.b32.xlu1 %v1336_v3, %s2761_s26  ;;  %v3393_v56 = vld [vmem:[#allocation2 + $0x18] sm:$0xf]  ;;  %v2685_v28 = vtrunc.f32 %v3347_v7  ;;  %v953_v45 = vshrl.u32 %v3278_v51, 16  ;;  %v4501_v60 = vrot.slane %v3229_v37, 6  ;;  %vm498_vm14 = vcmp.ge.f32.partialorder %v3374_v49, 1.0 }
 0x101   : > { %v375_v4 = vadd.f32 0.5, %v4500_v12  ;;  %v4502_v34 = vrot.slane %v3362_v30, 6  ;;  %v3412_v7 = vor.u32 %v1678_v0, %v1675_v11  ;;  %v3414_v3 = vld [vmem:[#allocation2 + $0x18] sm:$0xf]  ;;  %v4505_v37 = vcvt.s32.f32 %v3083_v38  ;;  %vm3451_vm8 = vmand %vm484_vm7, %vm498_vm14 }
 0x102   : > { %v1567_v13 = vrot.slane %v4501_v60, 4  ;;  %vm457_vm2 = vcmp.ge.f32.partialorder %v3349_v39, 1.0  ;;  %v4395_v60 = vrot.slane %v3391_v48, 5  ;;  %v996_v0 = vor.u32 %v995_v55, %v3334_v61 }
 0x103   : > { %v1466_v27 = vsel %vm3225_vm3, %v2516_v58, %v4502_v34  ;;  %v3418_v51 = vsub.f32 %v4505_v37, %v429_v43  ;;  %v4506_v58 = vrot.slane %v3370_v46, 6  ;;  %v999_v11 = vshll.u32 %v3393_v56, 16  ;;  %v1275_v37 = vld [vmem:[#allocation2 + $0x4] sm:$0xe] }
 0x104   : > { %1494 = vrot.lane.b32.xlu0 %v1466_v27, %s2759_s24  ;;  %v1671_v38 = vrot.slane %v3389_v21, 4  ;;  %vm471_vm13 = vcmp.le.f32.partialorder %v3349_v39, 8.0  ;;  %v2686_v43 = vcvt.f32.s32 %v2685_v28  ;;  %v3436_v34 = vmul.f32 0.1, %v375_v4 }
 0x105   : > { %v1569_v12 = vsel %vm3225_vm3, %v1567_v13, %v4506_v58  ;;  %v4507_v13 = vrot.slane %v3245_v31, 5  ;;  %v955_v55 = vrot.slane %v953_v45, 4  ;;  %vm526_vm9 = vcmp.le.f32.partialorder %v3374_v49, 8.0  ;;  %v3445_v58 = vld [vmem:[#allocation2 + $0x18] sm:$0xf]  ;;  %vm3474_vm1 = vmand %vm457_vm2, %vm471_vm13 }
 0x106   : > { %1594 = vrot.lane.b32.xlu1 %v1569_v12, %s2757_s22  ;;  %v1680_v63 = vsel %vm3408_vm5, %v1671_v38, %v3412_v7  ;;  %v3447_v12 = vld [vmem:[#allocation2 + $0x8] sm:$0xf]  ;;  %v3457_v31 = vadd.f32 %v2940_v32, %v3249_v33  ;;  %vm499_vm11 = vcmp.ge.f32.partialorder %v3418_v51, 1.0  ;;  %vm527_vm12 = vcmp.le.f32.partialorder %v3418_v51, 8.0  ;;  %vm3495_vm10 = vmand %vm3451_vm8, %vm526_vm9 }
 0x107   : > { %v1125_v27 = vrot.slane %v4507_v13, 4  ;;  %v4510_v4 = vrot.slane %v3257_v41, 5  ;;  %v997_v13 = vrot.slane %v996_v0, 4  ;;  %v3468_v61 = vrot.slane %v999_v11, 5  ;;  %v1276_v33 = vld [vmem:[#allocation2 + $0x8] sm:$0xf]  ;;  %vm3507_vm14 = vmand %vm3474_vm1, %vm499_vm11 }
 0x108   : > { %1755 = vrot.lane.b32.xlu0 %v1680_v63, %s2762_s27  ;;  %v1290_v63 = vshrl.u32 %v1275_v37, 16  ;;  %v1293_v18 = vshll.u32 %v1275_v37, 16  ;;  %v2687_v41 = vtrunc.f32 %v3436_v34  ;;  %v4513_v0 = vrot.slane %v3414_v3, 5  ;;  %vm541_vm2 = vmand %vm3507_vm14, %vm527_vm12 }
 0x109   : > { %v1127_v45 = vsel %vm3200_vm15, %v1125_v27, %v4395_v60  ;;  %v1216_v38 = vrot.slane %v4510_v4, 4  ;;  %v1633_v27 = vld [vmem:[#allocation2 + $0x18] sm:$0xf]  ;;  %v3479_v60 = vcvt.s32.f32 %v2686_v43  ;;  %v3487_v4 = vld [vmem:[#allocation2 + $0xc] sm:$0xf]  ;;  %v956_v15 = vor.u32 %v955_v55, %v3301_v36 }
 0x10a   : > { %1150 = vrot.lane.b32.xlu1 %v1127_v45, %s2756_s21  ;;  %v959_v45 = vshll.u32 %v3447_v12, 16  ;;  %v4516_v34 = vrot.slane %v3269_v10, 6  ;;  %v1299_v39 = vshrl.u32 %v1276_v33, 16  ;;  %v1302_v9 = vshll.u32 %v1276_v33, 16 }
 0x10b   : > { %v1218_v11 = vsel %vm3200_vm15, %v1216_v38, %v4513_v0  ;;  %v4517_v38 = vrot.slane %v3343_v57, 5  ;;  %v1002_v10 = vsel %vm3315_vm0, %v997_v13, %v3468_v61  ;;  %v1683_v55 = vshrl.u32 %v1633_v27, 16 }
 0x10c   : > { %v1476_v37 = vrot.slane %v4516_v34, 4  ;;  %1242 = vrot.lane.b32.xlu0 %v1218_v11, %s2758_s23  ;;  %v1686_v28 = vshll.u32 %v1633_v27, 16  ;;  %v787_v57 = vmax.f32 %v3457_v31, 0.0  ;;  %v1292_v34 = vrot.slane %v1290_v63, 5 }
 0x10d   : > { %v1207_v0 = vrot.slane %v4517_v38, 4  ;;  %v1295_v62 = vrot.slane %v1293_v18, 6  ;;  %v3520_v38 = vadd.f32 %v2940_v32, %v3280_v1  ;;  %v4520_v11 = vrot.slane %v3445_v58, 6  ;;  %v3534_v18 = vld [vmem:[#allocation2 + $0xc] sm:$0xf] }
 0x10e   : > { %1053 = vrot.lane.b32.xlu1 %v1002_v10, %s2760_s25  ;;  %v957_v13 = vrot.slane %v956_v15, 4  ;;  %v3526_v44 = vrot.slane %v959_v45, 5  ;;  %v829_v27 = vsel %vm3495_vm10, %v787_v57, 0.0  ;;  %v1301_v1 = vrot.slane %v1299_v39, 5 }
 0x10f   : > { %v1478_v49 = vsel %vm3225_vm3, %v1476_v37, %v4520_v11  ;;  %v1304_v63 = vrot.slane %v1302_v9, 6  ;;  %v2573_v10 = vpack.c.bf16 %v829_v27, %v829_v27  ;;  %v788_v33 = vmax.f32 %v3520_v38, 0.0 }
 0x110   : > { %1502 = vrot.lane.b32.xlu0 %v1478_v49, %s2759_s24  ;;  %v4521_v15 = vrot.slane %v3487_v4, 5  ;;  %v4522_v43 = vrot.slane %v3362_v30, 6  ;;  %v1685_v37 = vrot.slane %v1683_v55, 6  ;;  %v1688_v36 = vrot.slane %v1686_v28, 7  ;;  %v1535_v55 = vld [vmem:[#allocation2 + $0x8] sm:$0xc] }
 0x111   : > { %v1296_v57 = vor.u32 %v1295_v62, %v1292_v34  ;;  %vm4523_vm7 = vcmask 125952   ;;  %v830_v9 = vsel %vm541_vm2, %v788_v33, 0.0  ;;  %v1468_v39 = vrot.slane %v3534_v18, 6  ;;  %v905_v28 = vld [vmem:[#allocation2] sm:$0xf] }
 0x112   : > { %v1209_v45 = vsel %vm3200_vm15, %v1207_v0, %v4521_v15  ;;  %v1467_v51 = vrot.slane %v4522_v43, 4  ;;  %900 = vst.msk [vmem:[#allocation2 + $0x24] sm:$0xf] %vm4523_vm7, %v2573_v10  ;;  %v2574_v11 = vpack.c.bf16 %v830_v9, %v830_v9  ;;  %v430_v49 = vmul.f32 10.0, %v3479_v60  ;;  %v3560_v62 = vld [vmem:[#allocation2 + $0x1c] sm:$0xf]  ;;  %vm4524_vm13 = vmmov %vm4523_vm7 }
 0x113   : > { %1236 = vrot.lane.b32.xlu1 %v1209_v45, %s2758_s23  ;;  %v2688_v27 = vcvt.f32.s32 %v2687_v41  ;;  %v962_v0 = vsel %vm3315_vm0, %v957_v13, %v3526_v44  ;;  %v3551_v30 = vor.u32 %v1304_v63, %v1301_v1  ;;  %v3558_v34 = vor.u32 %v1688_v36, %v1685_v37  ;;  %v1280_v41 = vld [vmem:[#allocation2 + $0x18] sm:$0xf]  ;;  %vm4525_vm9 = vmmov %vm4523_vm7  ;;  %v909_v13 = vld [vmem:[#allocation2 + $0x10] sm:$0xf] }
 0x114   : > { %1045 = vrot.lane.b32.xlu0 %v962_v0, %s2760_s25  ;;  %v1469_v33 = vsel %vm3225_vm3, %v1467_v51, %v1468_v39  ;;  %901 = vst.msk [vmem:[#allocation2 + $0x28] sm:$0xf] %vm4524_vm13, %v2574_v11  ;;  %v1297_v1 = vrot.slane %v1296_v57, 4  ;;  %vm458_vm8 = vcmp.ge.f32.partialorder %v3479_v60, 1.0  ;;  %vm4526_vm11 = vmmov %vm4523_vm7  ;;  %v910_v63 = vld [vmem:[#allocation2 + $0x14] sm:$0xf]  ;;  %v4527_v51 = vcvt.s32.f32 %v3260_v50 }
 0x115   : > { %915 = vst.msk [vmem:[#allocation3] sm:$0xf] %vm4525_vm9, %v905_v28  ;;  %v906_v10 = vld [vmem:[#allocation2 + $0x4] sm:$0xf]  ;;  %v1681_v15 = vrot.slane %v3412_v7, 4  ;;  %v2517_v43 = vrot.slane %v1535_v55, 10  ;;  %v417_v36 = vcvt.s32.f32 %v2688_v27  ;;  %vm4528_vm12 = vmmov %vm4523_vm7 }
 0x116   : > { %919 = vst.msk [vmem:[#allocation3 + $0x20] sm:$0xf] %vm4526_vm11, %v909_v13  ;;  %v1536_v45 = vld [vmem:[#allocation2 + $0xc] sm:$0xf]  ;;  %v444_v37 = vsub.f32 %v4527_v51, %v430_v49  ;;  %vm4529_vm1 = vmmov %vm4523_vm7  ;;  %v907_v9 = vld [vmem:[#allocation2 + $0x8] sm:$0xf]  ;;  %v1306_v57 = vsel %vm3366_vm6, %v1297_v1, %v3551_v30 }
 0x117   : > { %1496 = vrot.lane.b32.xlu1 %v1469_v33, %s2759_s24  ;;  %920 = vst.msk [vmem:[#allocation3 + $0x28] sm:$0xf] %vm4528_vm12, %v910_v63  ;;  %v1339_v11 = vshrl.u32 %v1280_v41, 16  ;;  %v1342_v0 = vshll.u32 %v1280_v41, 16  ;;  %vm4530_vm10 = vmmov %vm4529_vm1  ;;  %v911_v7 = vld [vmem:[#allocation2 + $0x18] sm:$0xf]  ;;  %v1690_v50 = vsel %vm3408_vm5, %v1681_v15, %v3558_v34 }
 0x118   : > { %916 = vst.msk [vmem:[#allocation3 + $0x8] sm:$0xf] %vm4529_vm1, %v906_v10  ;;  %v908_v28 = vld [vmem:[#allocation2 + $0xc] sm:$0xf]  ;;  %1397 = vrot.lane.b32.xlu0 %v1306_v57, %s2761_s26  ;;  %v4531_v49 = vrot.slane %v3414_v3, 5  ;;  %v1220_v55 = vrot.slane %v3560_v62, 5  ;;  %vm4532_vm2 = vmmov %vm4529_vm1 }
 0x119   : > { %917 = vst.msk [vmem:[#allocation3 + $0x10] sm:$0xf] %vm4530_vm10, %v907_v9  ;;  %vm472_vm14 = vcmp.le.f32.partialorder %v3479_v60, 8.0  ;;  %vm4533_vm7 = vmmov %vm4529_vm1  ;;  %v1559_v33 = vrot.slane %v1536_v45, 6  ;;  %v3587_v41 = vld [vmem:[#allocation2 + $0x1c] sm:$0xf]  ;;  %v4538_v60 = vcvt.s32.f32 %v3328_v6 }
 0x11a   : > { %v1219_v27 = vrot.slane %v4531_v49, 4  ;;  %921 = vst.msk [vmem:[#allocation3 + $0x30] sm:$0xf] %vm4532_vm2, %v911_v7  ;;  %v1087_v13 = vld [vmem:[#allocation2 + $0xc] sm:$0xf]  ;;  %vm500_vm13 = vcmp.ge.f32.partialorder %v444_v37, 1.0  ;;  %vm486_vm9 = vmand %vm458_vm8, %vm472_vm14 }
 0x11b   : > { %918 = vst.msk [vmem:[#allocation3 + $0x18] sm:$0xf] %vm4533_vm7, %v908_v28  ;;  %1757 = vrot.lane.b32.xlu1 %v1690_v50, %s2762_s27  ;;  %v431_v1 = vmul.f32 10.0, %v417_v36  ;;  %v1560_v3 = vsel %vm3225_vm3, %v2517_v43, %v1559_v33  ;;  %v4534_v63 = vrot.slane %v3305_v40, 5  ;;  %v1341_v15 = vrot.slane %v1339_v11, 5  ;;  %vm3604_vm11 = vmand %vm486_vm9, %vm500_vm13 }
 0x11c   : > { %v1344_v51 = vrot.slane %v1342_v0, 6  ;;  %1588 = vrot.lane.b32.xlu0 %v1560_v3, %s2757_s22  ;;  %v1221_v45 = vsel %vm3200_vm15, %v1219_v27, %v1220_v55  ;;  %v4535_v9 = vrot.slane %v3445_v58, 6  ;;  %v1480_v43 = vrot.slane %v3587_v41, 6  ;;  %v1277_v11 = vld [vmem:[#allocation2 + $0xc] sm:$0xf] }
 0x11d   : > { %v1116_v10 = vrot.slane %v4534_v63, 4  ;;  %v1117_v40 = vrot.slane %v1087_v13, 5  ;;  %vm528_vm8 = vcmp.le.f32.partialorder %v444_v37, 8.0  ;;  %v445_v7 = vsub.f32 %v4538_v60, %v431_v1  ;;  %v3620_v13 = vld [vmem:[#allocation2 + $0x1c] sm:$0xf] }
 0x11e   : > { %v1479_v57 = vrot.slane %v4535_v9, 4  ;;  %vm459_vm12 = vcmp.ge.f32.partialorder %v417_v36, 1.0  ;;  %v963_v28 = vshrl.u32 %v3447_v12, 16  ;;  %v3613_v50 = vor.u32 %v1344_v51, %v1341_v15  ;;  %v1281_v3 = vld [vmem:[#allocation2 + $0x1c] sm:$0xf]  ;;  %vm3627_vm10 = vmand %vm3604_vm11, %vm528_vm8 }
 0x11f   : > { %1244 = vrot.lane.b32.xlu1 %v1221_v45, %s2758_s23  ;;  %v1118_v58 = vsel %vm3200_vm15, %v1116_v10, %v1117_v40  ;;  %vm473_vm1 = vcmp.le.f32.partialorder %v417_v36, 8.0  ;;  %v1561_v27 = vrot.slane %v1559_v33, 4  ;;  %v1337_v6 = vrot.slane %v3360_v25, 4  ;;  %v3646_v9 = vld [vmem:[#allocation2 + $0x1c] sm:$0xf] }
 0x120   : > { %v1481_v49 = vsel %vm3225_vm3, %v1479_v57, %v1480_v43  ;;  %1144 = vrot.lane.b32.xlu0 %v1118_v58, %s2756_s21  ;;  %v1309_v12 = vshrl.u32 %v1277_v11, 16  ;;  %v1312_v1 = vshll.u32 %v1277_v11, 16  ;;  %v3633_v10 = vadd.f32 %v2940_v32, %v3307_v24  ;;  %vm3638_vm14 = vmand %vm459_vm12, %vm473_vm1  ;;  %v912_v0 = vld [vmem:[#allocation2 + $0x1c] sm:$0xf]  ;;  %v914_v60 = vld [vmem:[#allocation2 + $0x24] sm:$0xf] }
 0x121   : > { %v1119_v33 = vrot.slane %v1117_v40, 4  ;;  %v4541_v15 = vrot.slane %v3370_v46, 6  ;;  %vm501_vm2 = vcmp.ge.f32.partialorder %v445_v7, 1.0  ;;  %v1346_v37 = vsel %vm3366_vm6, %v1337_v6, %v3613_v50 }
 0x122   : > { %v1571_v45 = vrot.slane %v3620_v13, 6  ;;  %v965_v24 = vrot.slane %v963_v28, 4  ;;  %v789_v57 = vmax.f32 %v3633_v10, 0.0  ;;  %v4544_v46 = vrot.slane %v3177_v26, 6  ;;  %vm3660_vm7 = vmand %vm3638_vm14, %vm501_vm2 }
 0x123   : > { %1504 = vrot.lane.b32.xlu1 %v1481_v49, %s2759_s24  ;;  %v1570_v51 = vrot.slane %v4541_v15, 4  ;;  %v1349_v40 = vshrl.u32 %v1281_v3, 16  ;;  %v1352_v11 = vshll.u32 %v1281_v3, 16  ;;  %v1311_v58 = vrot.slane %v1309_v12, 5  ;;  %v928_v3 = vld [vmem:[#allocation2 + $0xc] sm:$0xf] }
 0x124   : > { %v1563_v36 = vsel %vm3225_vm3, %v1561_v27, %v4544_v46  ;;  %1405 = vrot.lane.b32.xlu0 %v1346_v37, %s2761_s26  ;;  %v1314_v49 = vrot.slane %v1312_v1, 6  ;;  %v831_v28 = vsel %vm3627_vm10, %v789_v57, 0.0  ;;  %vm529_vm13 = vcmp.le.f32.partialorder %v445_v7, 8.0  ;;  %v913_v27 = vld [vmem:[#allocation2 + $0x20] sm:$0xf] }
 0x125   : > { %vm4547_vm9 = vcmask 125952   ;;  %v4549_v6 = vrot.slane %v3391_v48, 5  ;;  %v1129_v1 = vrot.slane %v3646_v9, 5  ;;  %v2575_v63 = vpack.c.bf16 %v831_v28, %v831_v28  ;;  %vm543_vm1 = vmand %vm3660_vm7, %vm529_vm13  ;;  %v3702_v28 = vld [vmem:[#allocation2 + $0x10] sm:$0xf] }
 0x126   : > { %922 = vst.msk [vmem:[#allocation3 + $0x38] sm:$0xf] %vm4547_vm9, %v912_v0  ;;  %vm4548_vm11 = vmmov %vm4547_vm9  ;;  %v1572_v15 = vsel %vm3225_vm3, %v1570_v51, %v1571_v45  ;;  %v1307_v25 = vrot.slane %v3551_v30, 4  ;;  %v966_v37 = vor.u32 %v965_v24, %v3526_v44  ;;  %v772_v57 = vadd.f32 %v2940_v32, %v3336_v35  ;;  %v1630_v35 = vld [vmem:[#allocation2 + $0xc] sm:$0xf] }
 0x127   : > { %1590 = vrot.lane.b32.xlu1 %v1563_v36, %s2757_s22  ;;  %924 = vst.msk [vmem:[#allocation3 + $0x48] sm:$0xf] %vm4548_vm11, %v914_v60  ;;  %v1128_v12 = vrot.slane %v4549_v6, 4  ;;  %vm4550_vm8 = vmmov %vm4547_vm9  ;;  %v4551_v48 = vrot.slane %v3192_v20, 5  ;;  %v1351_v46 = vrot.slane %v1349_v40, 5  ;;  %v1354_v36 = vrot.slane %v1352_v11, 6 }
 0x128   : > { %923 = vst.msk [vmem:[#allocation3 + $0x40] sm:$0xf] %vm4550_vm8, %v913_v27  ;;  %1596 = vrot.lane.b32.xlu0 %v1572_v15, %s2757_s22  ;;  %vm4552_vm12 = vmmov %vm4550_vm8  ;;  %v3688_v44 = vor.u32 %v1314_v49, %v1311_v58  ;;  %v969_v32 = vshll.u32 %v928_v3, 16  ;;  %v790_v20 = vmax.f32 %v772_v57, 0.0  ;;  %v1003_v30 = vshrl.u32 %v3393_v56, 16 }
 0x129   : > { %v1121_v9 = vsel %vm3200_vm15, %v1119_v33, %v4551_v48  ;;  %902 = vst.msk [vmem:[#allocation2 + $0x2c] sm:$0xf] %vm4552_vm12, %v2575_v63  ;;  %v1130_v33 = vsel %vm3200_vm15, %v1128_v12, %v1129_v1  ;;  %v1347_v7 = vrot.slane %v3613_v50, 4  ;;  %v967_v24 = vrot.slane %v966_v37, 4  ;;  %v1629_v40 = vld [vmem:[#allocation2 + $0x8] sm:$0xc]  ;;  %vm4553_vm10 = vmmov %vm4550_vm8 }
 0x12a   : > { %v1316_v51 = vsel %vm3366_vm6, %v1307_v25, %v3688_v44  ;;  %v832_v11 = vsel %vm543_vm1, %v790_v20, 0.0  ;;  %v3698_v0 = vor.u32 %v1354_v36, %v1351_v46  ;;  %v3700_v60 = vld [vmem:[#allocation2 + $0x20] sm:$0xf]  ;;  %v1653_v58 = vshrl.u32 %v1630_v35, 16  ;;  %v932_v6 = vld [vmem:[#allocation2 + $0x1c] sm:$0xf]  ;;  %vm4572_vm13 = vmmov %vm4550_vm8 }
 0x12b   : > { %1146 = vrot.lane.b32.xlu1 %v1121_v9, %s2756_s21  ;;  %v1656_v56 = vshll.u32 %v1630_v35, 16  ;;  %v2576_v49 = vpack.c.bf16 %v832_v11, %v832_v11  ;;  %v971_v26 = vrot.slane %v969_v32, 5  ;;  %v973_v27 = vshrl.u32 %v928_v3, 16  ;;  %v3719_v32 = vld [vmem:[#allocation2 + $0x20] sm:$0xf]  ;;  %vm4574_vm9 = vmmov %vm4550_vm8 }
 0x12c   : > { %1152 = vrot.lane.b32.xlu0 %v1130_v33, %s2756_s21  ;;  %v1005_v50 = vrot.slane %v1003_v30, 4  ;;  %v1644_v12 = vshrl.u32 %v1629_v40, 16  ;;  %v1647_v63 = vshll.u32 %v1629_v40, 16  ;;  %v1573_v25 = vrot.slane %v1571_v45, 4  ;;  %v1634_v11 = vld [vmem:[#allocation2 + $0x1c] sm:$0xf]  ;;  %vm4576_vm11 = vmmov %vm4550_vm8 }
 0x12d   : > { %903 = vst.msk [vmem:[#allocation2 + $0x30] sm:$0xf] %vm4553_vm10, %v2576_v49  ;;  %v972_v15 = vsel %vm3315_vm0, %v967_v24, %v971_v26  ;;  %v4399_v37 = vrot.slane %v3700_v60, 6  ;;  %v4554_v57 = vrot.slane %v3487_v4, 5  ;;  %v1356_v3 = vsel %vm3366_vm6, %v1347_v7, %v3698_v0  ;;  %vm4579_vm12 = vmmov %vm4550_vm8 }
 0x12e   : > { %v1655_v9 = vrot.slane %v1653_v58, 6  ;;  %v1658_v46 = vrot.slane %v1656_v56, 7  ;;  %v4404_v36 = vrot.slane %v3702_v28, 7  ;;  %v1470_v13 = vrot.slane %v1468_v39, 4  ;;  %vm4580_vm1 = vmmov %vm4550_vm8 }
 0x12f   : > { %1399 = vrot.lane.b32.xlu1 %v1316_v51, %s2761_s26  ;;  %v1210_v48 = vrot.slane %v4554_v57, 4  ;;  %v1009_v45 = vshll.u32 %v932_v6, 16  ;;  %v1006_v4 = vor.u32 %v1005_v50, %v3468_v61  ;;  %v975_v35 = vrot.slane %v973_v27, 4  ;;  %vm4583_vm10 = vmmov %vm4580_vm1 }
 0x130   : > { %1047 = vrot.lane.b32.xlu0 %v972_v15, %s2760_s25  ;;  %v1646_v20 = vrot.slane %v1644_v12, 6  ;;  %v1649_v30 = vrot.slane %v1647_v63, 7  ;;  %v1575_v51 = vsel %vm3225_vm3, %v1573_v25, %v4399_v37  ;;  %v4555_v7 = vrot.slane %v3207_v54, 5  ;;  %v3746_v63 = vld [vmem:[#allocation2 + $0x20] sm:$0xf] }
 0x131   : > { %v1131_v18 = vrot.slane %v1129_v1, 4  ;;  %v4398_v61 = vrot.slane %v3719_v32, 5  ;;  %v1659_v39 = vor.u32 %v1658_v46, %v1655_v9  ;;  %v1013_v40 = vshrl.u32 %v932_v6, 16  ;;  %v3744_v1 = vld [vmem:[#allocation2 + $0x14] sm:$0xf] }
 0x132   : > { %v1212_v24 = vsel %vm3200_vm15, %v1210_v48, %v4555_v7  ;;  %v3737_v58 = vrot.slane %v4404_v36, 4  ;;  %v4556_v56 = vrot.slane %v3247_v17, 6  ;;  %v1011_v49 = vrot.slane %v1009_v45, 5  ;;  %v3756_v9 = vld [vmem:[#allocation2 + $0xc] sm:$0xf] }
 0x133   : > { %1407 = vrot.lane.b32.xlu1 %v1356_v3, %s2761_s26  ;;  %v1007_v27 = vrot.slane %v1006_v4, 4  ;;  %v976_v50 = vor.u32 %v975_v35, %v971_v26  ;;  %v1650_v12 = vor.u32 %v1649_v30, %v1646_v20  ;;  %v1693_v6 = vshrl.u32 %v1634_v11, 16  ;;  %v3754_v3 = vld [vmem:[#allocation2 + $0x8] sm:$0x8]  ;;  %v1635_v26 = vld [vmem:[#allocation2 + $0x20] sm:$0xf] }
 0x134   : > { %1238 = vrot.lane.b32.xlu0 %v1212_v24, %s2758_s23  ;;  %v1472_v54 = vsel %vm3225_vm3, %v1470_v13, %v4556_v56  ;;  %v1696_v15 = vshll.u32 %v1634_v11, 16  ;;  %v1133_v25 = vsel %vm3200_vm15, %v1131_v18, %v4398_v61  ;;  %v1661_v17 = vrot.slane %v1659_v39, 4  ;;  %v3759_v46 = vld [vmem:[#allocation2 + $0x1c] sm:$0xf]  ;;  %v3764_v4 = vld [vmem:[#allocation2 + $0x18] sm:$0xf] }
 0x135   : > { %v1015_v57 = vrot.slane %v1013_v40, 4  ;;  %v4403_v48 = vrot.slane %v3744_v1, 7  ;;  %v1012_v13 = vsel %vm3315_vm0, %v1007_v27, %v1011_v49  ;;  %v1019_v45 = vshll.u32 %v3746_v63, 16  ;;  %v3817_v37 = vld [vmem:[#allocation2 + $0x24] sm:$0xf] }
 0x136   : > { %v977_v35 = vrot.slane %v976_v50, 4  ;;  %v1651_v20 = vrot.slane %v1650_v12, 4  ;;  %v1695_v30 = vrot.slane %v1693_v6, 6  ;;  %v1670_v7 = vsel %vm3408_vm5, %v1661_v17, %v3389_v21  ;;  %v3780_v12 = vld [vmem:[#allocation2 + $0x20] sm:$0xf] }
 0x137   : > { %1598 = vrot.lane.b32.xlu1 %v1575_v51, %s2757_s22  ;;  %v1698_v51 = vrot.slane %v1696_v15, 7  ;;  %v1016_v24 = vor.u32 %v1015_v57, %v1011_v49  ;;  %v1703_v18 = vshrl.u32 %v1635_v26, 16  ;;  %v1706_v40 = vshll.u32 %v1635_v26, 16  ;;  %v1188_v17 = vld [vmem:[#allocation2 + $0x20] sm:$0xf] }
 0x138   : > { %1498 = vrot.lane.b32.xlu0 %v1472_v54, %s2759_s24  ;;  %v4405_v11 = vrot.slane %v3756_v9, 7  ;;  %v4400_v56 = vrot.slane %v3759_v46, 7  ;;  %v3776_v27 = vrot.slane %v4403_v48, 4  ;;  %v4402_v21 = vrot.slane %v3764_v4, 7  ;;  %v3787_v57 = vld [vmem:[#allocation2 + $0x24] sm:$0xf] }
 0x139   : > { %v1660_v49 = vsel %vm3408_vm5, %v1651_v20, %v1659_v39  ;;  %v3784_v6 = vrot.slane %v1019_v45, 5  ;;  %v1691_v15 = vrot.slane %v3558_v34, 4  ;;  %v982_v26 = vsel %vm3315_vm0, %v977_v35, %v3303_v29  ;;  %v1445_v29 = vld [vmem:[#allocation2 + $0x20] sm:$0xf]  ;;  %v3829_v48 = vld [vmem:[#allocation2 + $0x2c] sm:$0xf] }
 0x13a   : > { %v1708_v61 = vrot.slane %v1706_v40, 7  ;;  %v3795_v39 = vrot.slane %v4402_v21, 4  ;;  %v3799_v34 = vrot.slane %v4405_v11, 4  ;;  %v3803_v45 = vrot.slane %v4400_v56, 4  ;;  %v3819_v56 = vld [vmem:[#allocation2 + $0x28] sm:$0xf] }
 0x13b   : > { %1154 = vrot.lane.b32.xlu1 %v1133_v25, %s2756_s21  ;;  %v1699_v25 = vor.u32 %v1698_v51, %v1695_v30  ;;  %v4401_v20 = vrot.slane %v3780_v12, 7  ;;  %vm1814_vm14 = vcmask 1040384   ;;  %vm1815_vm2 = vcmask 1044484   ;;  %v1282_v51 = vld [vmem:[#allocation2 + $0x20] sm:$0xf] }
 0x13c   : > { %1055 = vrot.lane.b32.xlu0 %v1012_v13, %s2760_s25  ;;  %v1017_v13 = vrot.slane %v1016_v24, 4  ;;  %v1222_v35 = vrot.slane %v1220_v55, 4  ;;  %v1223_v30 = vrot.slane %v1188_v17, 5  ;;  %v1283_v24 = vld [vmem:[#allocation2 + $0x24] sm:$0xf]  ;;  %v4406_v40 = vrot.slane %v3787_v57, 7  ;;  %vm3890_vm7 = vmor %vm1814_vm14, %vm1815_vm2 }
 0x13d   : > { %v1701_v55 = vrot.slane %v1699_v25, 4  ;;  %v3827_v21 = vld [vmem:[#allocation2 + $0x24] sm:$0xf]  ;;  %v1362_v36 = vshll.u32 %v1282_v51, 16  ;;  %v1369_v50 = vshrl.u32 %v1283_v24, 16  ;;  %v1372_v11 = vshll.u32 %v1283_v24, 16  ;;  %vm4584_vm14 = vmmov %vm4580_vm1 }
 0x13e   : > { %v1022_v62 = vsel %vm3315_vm0, %v1017_v13, %v3784_v6  ;;  %v1224_v13 = vsel %vm3200_vm15, %v1222_v35, %v1223_v30  ;;  %v1840_v24 = vrot.slane %v3819_v56, 7  ;;  %v3851_v54 = vld [vmem:[#allocation2 + $0x24] sm:$0xf]  ;;  %v2309_v33 = vrot.slane %v3633_v10, 3  ;;  %vm4585_vm2 = vmmov %vm4580_vm1 }
 0x13f   : > { %1753 = vrot.lane.b32.xlu1 %v1670_v7, %s2762_s27  ;;  %v1705_v7 = vrot.slane %v1703_v18, 6  ;;  %v3811_v18 = vrot.slane %v4401_v20, 4  ;;  %v1483_v20 = vrot.slane %v1445_v29, 6  ;;  %v1023_v56 = vshrl.u32 %v3746_v63, 16 }
 0x140   : > { %1751 = vrot.lane.b32.xlu0 %v1660_v49, %s2762_s27  ;;  %v1843_v49 = vrot.slane %v3829_v48, 7  ;;  %v4558_v63 = vrot.slane %v2983_v47, 3  ;;  %v2718_v47 = vld [vmem:[%s4355_s3 + $0x38] sm:$0xff]  }
 0x141   : > { %v3825_v17 = vor.u32 %v1708_v61, %v1705_v7  ;;  %v1482_v61 = vrot.slane %v1480_v43, 4  ;;  %v1225_v7 = vrot.slane %v1223_v30, 4  ;;  %v1485_v29 = vrot.slane %v1483_v20, 4 }
 0x142   : > { %v1364_v43 = vrot.slane %v1362_v36, 6  ;;  %v1371_v30 = vrot.slane %v1369_v50, 5  ;;  %v4557_v36 = vrot.slane %v3827_v21, 6  ;;  %v4559_v50 = vrot.slane %v3130_v59, 3 }
 0x143   : > { %1049 = vrot.lane.b32.xlu1 %v982_v26, %s2760_s25  ;;  %v1700_v26 = vsel %vm3408_vm5, %v1691_v15, %v1699_v25  ;;  %v1359_v15 = vshrl.u32 %v1282_v51, 16  ;;  %v4407_v25 = vrot.slane %v3817_v37, 5  ;;  %v3842_v51 = vrot.slane %v4406_v40, 4 }
 0x144   : > { %1759 = vrot.lane.b32.xlu0 %v1700_v26, %s2762_s27  ;;  %v1710_v35 = vsel %vm3408_vm5, %v1701_v55, %v3825_v17  ;;  %v1842_v40 = vrot.slane %v1840_v24, 4  ;;  %v1484_v48 = vsel %vm3225_vm3, %v1482_v61, %v1483_v20  ;;  %v1802_v26 = vld [vmem:[#allocation2 + $0x30] sm:$0x7]  ;;  %v3873_v20 = vsel %vm2289_vm4, %v4559_v50, %v4558_v63 }
 0x145   : > { %v1361_v41 = vrot.slane %v1359_v15, 5  ;;  %v1227_v55 = vsel %vm3200_vm15, %v1225_v7, %v4407_v25  ;;  %v1845_v15 = vrot.slane %v1843_v49, 4  ;;  %v1577_v61 = vrot.slane %v3851_v54, 6  ;;  %v934_v7 = vld [vmem:[#allocation2 + $0x24] sm:$0xf] }
 0x146   : > { %v4566_v63 = vrot.slane %v3457_v31, 3  ;;  %v3911_v25 = vld [vmem:[#allocation2 + $0x28] sm:$0xf] }
 0x147   : > { %1057 = vrot.lane.b32.xlu1 %v1022_v62, %s2760_s25  ;;  %v1317_v62 = vrot.slane %v3688_v44, 4  ;;  %v1374_v44 = vrot.slane %v1372_v11, 6  ;;  %v1487_v11 = vsel %vm3225_vm3, %v1485_v29, %v4557_v36  ;;  %v4560_v29 = vrot.slane %v3158_v8, 3 }
 0x148   : > { %1246 = vrot.lane.b32.xlu0 %v1224_v13, %s2758_s23  ;;  %v1357_v13 = vrot.slane %v3698_v0, 4  ;;  %v1365_v0 = vor.u32 %v1364_v43, %v1361_v41  ;;  %v4568_v41 = vrot.slane %v3520_v38, 3  ;;  %v4569_v8 = vrot.slane %v3756_v9, 7 }
 0x149   : > { %v1326_v10 = vsel %vm3366_vm6, %v1317_v62, %v3358_v14  ;;  %v3895_v62 = vor.u32 %v1374_v44, %v1371_v30  ;;  %v4570_v30 = vrot.slane %v3754_v3, 11  ;;  %v4573_v3 = vrot.slane %v3744_v1, 7 }
 0x14a   : > { %v3916_v43 = vsel %vm2289_vm4, %v4568_v41, %v2309_v33 }
 0x14b   : > { %1761 = vrot.lane.b32.xlu1 %v1710_v35, %s2762_s27  ;;  %v4561_v35 = vrot.slane %v3096_v42, 3  ;;  %v4564_v42 = vrot.slane %v3205_v53, 3  ;;  %v1820_v44 = vsel %vm3890_vm7, %v4570_v30, %v4569_v8  ;;  %v3924_v53 = vld [vmem:[#allocation2 + $0x24] sm:$0xf]  ;;  %v1826_v9 = vsel %vm3890_vm7, %v3737_v58, %v4573_v3 }
 0x14c   : > { %1506 = vrot.lane.b32.xlu0 %v1484_v48, %s2759_s24  ;;  %v4565_v48 = vmov %v4560_v29  ;;  %1858 = vst.msk [vmem:[#allocation3 + $0x4] sm:$0xf] %vm4572_vm13, %v1820_v44  ;;  %v4577_v58 = vrot.slane %v3759_v46, 7  ;;  %v4581_v46 = vrot.slane %v3787_v57, 7  ;;  %v1135_v41 = vrot.slane %v3924_v53, 5  ;;  %vm4588_vm13 = vmmov %vm4580_vm1 }
 0x14d   : > { %v3883_v14 = vsel %vm2289_vm4, %v4561_v35, %v4560_v29  ;;  %v3902_v36 = vsel %vm2289_vm4, %v4565_v48, %v4564_v42  ;;  %v4567_v50 = vmov %v4564_v42  ;;  %v1846_v35 = vrot.slane %v1802_v26, 7  ;;  %1860 = vst.msk [vmem:[#allocation3 + $0x14] sm:$0xf] %vm4576_vm11, %v1826_v9 }
 0x14e   : > { %v3909_v29 = vsel %vm2289_vm4, %v4567_v50, %v4566_v63  ;;  %v1029_v42 = vshll.u32 %v934_v7, 16  ;;  %v2763_v48 = vmov 0   ;;  %v4571_v26 = vrot.slane %v3702_v28, 7  ;;  %v1636_v50 = vld [vmem:[#allocation2 + $0x24] sm:$0xf]  ;;  %v2719_v28 = vld [vmem:[%s4355_s3 + $0x30] sm:$0xff]  }
 0x14f   : > { %1248 = vrot.lane.b32.xlu1 %v1227_v55, %s2758_s23  ;;  %v1367_v55 = vrot.slane %v1365_v0, 4  ;;  %2018 = vmatprep.subr.bf16.mxu1 %v2763_v48  ;;  %v1033_v63 = vshrl.u32 %v934_v7, 16  ;;  %v4578_v7 = vrot.slane %v3780_v12, 7  ;;  %v1841_v12 = vsel %vm3890_vm7, %v3842_v51, %v1840_v24  ;;  %v1094_v24 = vld [vmem:[#allocation2 + $0x28] sm:$0x1] }
 0x150   : > { %v1823_v33 = vsel %vm3890_vm7, %v3799_v34, %v4571_v26  ;;  %1401 = vrot.lane.b32.xlu0 %v1326_v10, %s2761_s26  ;;  %2019 = vmatpush1.bf16.msra.mxu1 %v2718_v47  ;;  %v4575_v34 = vrot.slane %v3764_v4, 7  ;;  %v1832_v10 = vsel %vm3890_vm7, %v3795_v39, %v4577_v58  ;;  %v1580_v4 = vrot.slane %v3911_v25, 6  ;;  %1865 = vst.msk [vmem:[#allocation3 + $0x3c] sm:$0xf] %vm4584_vm14, %v1841_v12 }
 0x151   : > { %1859 = vst.msk [vmem:[#allocation3 + $0xc] sm:$0xf] %vm4574_vm9, %v1823_v33  ;;  %v1835_v47 = vsel %vm3890_vm7, %v3803_v45, %v4578_v7  ;;  %2020 = vmatprep.subr.bf16.mxu1 %v2763_v48  ;;  %v1844_v39 = vsel %vm3890_vm7, %v1842_v40, %v1843_v49  ;;  %v4582_v45 = vrot.slane %v3700_v60, 6  ;;  %v1847_v57 = vsel %vm3890_vm7, %v1845_v15, %v1846_v35 }
 0x152   : > { %v1829_v1 = vsel %vm3890_vm7, %v3776_v27, %v4575_v34  ;;  %1862 = vst.msk [vmem:[#allocation3 + $0x24] sm:$0xf] %vm4579_vm12, %v1832_v10  ;;  %v1838_v27 = vsel %vm3890_vm7, %v3811_v18, %v4581_v46  ;;  %v4586_v18 = vrot.slane %v3520_v38, 3  ;;  %v4587_v51 = vrot.slane %v3457_v31, 3  ;;  %v935_v31 = vld [vmem:[#allocation2 + $0x28] sm:$0x1] }
 0x153   : > { %1508 = vrot.lane.b32.xlu1 %v1487_v11, %s2759_s24  ;;  %1861 = vst.msk [vmem:[#allocation3 + $0x1c] sm:$0xf] %vm4550_vm8, %v1829_v1  ;;  %v1576_v11 = vrot.slane %v4582_v45, 4  ;;  %v1366_v60 = vsel %vm3366_vm6, %v1357_v13, %v1365_v0  ;;  %v1579_v49 = vrot.slane %v1577_v61, 4  ;;  %v1025_v8 = vrot.slane %v1023_v56, 4  ;;  %v2720_v13 = vld [vmem:[%s4355_s3 + $0x28] sm:$0xff]  }
 0x154   : > { %1863 = vst.msk [vmem:[#allocation3 + $0x2c] sm:$0xf] %vm4580_vm1, %v1835_v47  ;;  %v3988_v40 = vsel %vm2289_vm4, %v4587_v51, %v4586_v18  ;;  %v1713_v30 = vshrl.u32 %v1636_v50, 16  ;;  %v1376_v38 = vsel %vm3366_vm6, %v1367_v55, %v3895_v62  ;;  %1409 = vrot.lane.b32.xlu0 %v1366_v60, %s2761_s26  ;;  %v1031_v15 = vrot.slane %v1029_v42, 5  ;;  %2021 = vmatpush1.bf16.msra.mxu1 %v2719_v28  ;;  %v1637_v56 = vld [vmem:[#allocation2 + $0x28] sm:$0xf] }
 0x155   : > { %1864 = vst.msk [vmem:[#allocation3 + $0x34] sm:$0xf] %vm4583_vm10, %v1838_v27  ;;  %v1035_v59 = vrot.slane %v1033_v63, 4  ;;  %v1716_v35 = vshll.u32 %v1636_v50, 16  ;;  %2022 = vmatprep.subr.bf16.mxu1 %v2763_v48  ;;  %v1578_v0 = vsel %vm3225_vm3, %v1576_v11, %v1577_v61  ;;  %v1137_v44 = vrot.slane %v1135_v41, 4  ;;  %v2722_v46 = vld [vmem:[%s4355_s3 + $0x18] sm:$0xff]  }
 0x156   : > { %1866 = vst.msk [vmem:[#allocation3 + $0x44] sm:$0xf] %vm4585_vm2, %v1844_v39  ;;  %v1138_v55 = vrot.slane %v1094_v24, 5  ;;  %v4589_v53 = vrot.slane %v3719_v32, 5  ;;  %v1581_v26 = vsel %vm3225_vm3, %v1579_v49, %v1580_v4  ;;  %v1039_v33 = vshll.u32 %v935_v31, 16  ;;  %v2721_v32 = vld [vmem:[%s4355_s3 + $0x20] sm:$0xff]  }
 0x157   : > { %1867 = vst.msk [vmem:[#allocation3 + $0x4c] sm:$0xf] %vm4588_vm13, %v1847_v57  ;;  %1411 = vrot.lane.b32.xlu1 %v1376_v38, %s2761_s26  ;;  %v1026_v3 = vor.u32 %v1025_v8, %v3784_v6  ;;  %v1715_v9 = vrot.slane %v1713_v30, 6  ;;  %v1036_v54 = vor.u32 %v1035_v59, %v1031_v15  ;;  %v1718_v63 = vrot.slane %v1716_v35, 7  ;;  %v1190_v45 = vld [vmem:[#allocation2 + $0x28] sm:$0xf] }
 0x158   : > { %v1134_v42 = vrot.slane %v4589_v53, 4  ;;  %1600 = vrot.lane.b32.xlu0 %v1578_v0, %s2757_s22  ;;  %v1723_v50 = vshrl.u32 %v1637_v56, 16  ;;  %v1726_v61 = vshll.u32 %v1637_v56, 16  ;;  %2023 = vmatpush1.bf16.msra.mxu1 %v2720_v13  ;;  %v1139_v28 = vsel %vm3200_vm15, %v1137_v44, %v1138_v55  ;;  %v1284_v11 = vld [vmem:[#allocation2 + $0x28] sm:$0xf]  ;;  %v2723_v49 = vld [vmem:[%s4355_s3 + $0x10] sm:$0xff]  }
 0x159   : > { %2024 = vmatprep.subr.bf16.mxu1 %v2763_v48  ;;  %v1041_v34 = vrot.slane %v1039_v33, 5  ;;  %v1027_v1 = vrot.slane %v1026_v3, 4  ;;  %v1037_v58 = vrot.slane %v1036_v54, 4  ;;  %v1719_v10 = vor.u32 %v1718_v63, %v1715_v9  ;;  %v1285_v60 = vld [vmem:[#allocation2 + $0x2c] sm:$0x3] }
 0x15a   : > { %v1136_v6 = vsel %vm3200_vm15, %v1134_v42, %v1135_v41  ;;  %v1725_v7 = vrot.slane %v1723_v50, 6  ;;  %v1728_v47 = vrot.slane %v1726_v61, 7  ;;  %v1711_v39 = vrot.slane %v3825_v17, 4  ;;  %v1191_v17 = vld [vmem:[#allocation2 + $0x2c] sm:$0x1] }
 0x15b   : > { %1602 = vrot.lane.b32.xlu1 %v1581_v26, %s2757_s22  ;;  %v1032_v27 = vsel %vm3315_vm0, %v1027_v1, %v1031_v15  ;;  %v1042_v41 = vsel %vm3315_vm0, %v1037_v58, %v1041_v34  ;;  %v1721_v18 = vrot.slane %v1719_v10, 4  ;;  %v1229_v22 = vrot.slane %v1190_v45, 5  ;;  %v1447_v24 = vld [vmem:[#allocation2 + $0x28] sm:$0xf]  ;;  %v1448_v35 = vld [vmem:[#allocation2 + $0x2c] sm:$0x3] }
 0x15c   : > { %1156 = vrot.lane.b32.xlu0 %v1136_v6, %s2756_s21  ;;  %2025 = vmatpush1.bf16.msra.mxu1 %v2721_v32  ;;  %v4041_v51 = vor.u32 %v1728_v47, %v1725_v7  ;;  %v1379_v8 = vshrl.u32 %v1284_v11, 16  ;;  %v1382_v30 = vshll.u32 %v1284_v11, 16  ;;  %v1720_v38 = vsel %vm3408_vm5, %v1711_v39, %v1719_v10  ;;  %v2724_v42 = vld [vmem:[%s4355_s3 + $0x8] sm:$0xff]   ;;  %v1639_v58 = vld [vmem:[#allocation2 + $0x30] sm:$0x7]  ;;  %v2725_v7 = vld [vmem:[%s4355_s3] sm:$0xff]  }
 0x15d   : > { %2026 = vmatprep.subr.bf16.mxu1 %v2763_v48  ;;  %v4033_v12 = vpop.permute.xlu1 %1140  ;;  %v4590_v15 = vrot.slane %v3817_v37, 5  ;;  %v1389_v13 = vshrl.u32 %v1285_v60, 16  ;;  %v1392_v56 = vshll.u32 %v1285_v60, 16  ;;  %v1231_v55 = vrot.slane %v1229_v22, 4  ;;  %v1638_v26 = vld [vmem:[#allocation2 + $0x2c] sm:$0xf] }
 0x15e   : > { %v1730_v0 = vsel %vm3408_vm5, %v1721_v18, %v4041_v51  ;;  %v1232_v53 = vrot.slane %v1191_v17, 5  ;;  %v1489_v37 = vrot.slane %v1447_v24, 6  ;;  %v1492_v33 = vrot.slane %v1448_v35, 6  ;;  %v1544_v34 = vld [vmem:[#allocation2 + $0x2c] sm:$0xf] }
 0x15f   : > { %1158 = vrot.lane.b32.xlu1 %v1139_v28, %s2756_s21  ;;  %v4039_v57 = vpop.permute.xlu0 %1592  ;;  %v1228_v59 = vrot.slane %v4590_v15, 4  ;;  %v4591_v3 = vrot.slane %v3827_v21, 6  ;;  %v1381_v54 = vrot.slane %v1379_v8, 5  ;;  %v1384_v63 = vrot.slane %v1382_v30, 6  ;;  %v1545_v11 = vld [vmem:[#allocation2 + $0x30] sm:$0x3] }
 0x160   : > { %1059 = vrot.lane.b32.xlu0 %v1032_v27, %s2760_s25  ;;  %2027 = vmatpush1.bf16.msra.mxu1 %v2722_v46  ;;  %v1491_v32 = vrot.slane %v1489_v37, 4  ;;  %v1391_v28 = vrot.slane %v1389_v13, 5  ;;  %v1394_v6 = vrot.slane %v1392_v56, 6  ;;  %v1233_v1 = vsel %vm3200_vm15, %v1231_v55, %v1232_v53 }
 0x161   : > { %2028 = vmatprep.subr.bf16.mxu1 %v2763_v48  ;;  %v4050_v31 = vpop.permute.xlu1 %1240  ;;  %v1488_v9 = vrot.slane %v4591_v3, 4  ;;  %v1230_v50 = vsel %vm3200_vm15, %v1228_v59, %v1229_v22  ;;  %vm1073_vm4 = vcmask 257152   ;;  %v1733_v21 = vshrl.u32 %v1638_v26, 16 }
 0x162   : > { %v1736_v10 = vshll.u32 %v1638_v26, 16  ;;  %vm1170_vm0 = vcmask 388352   ;;  %v1385_v46 = vor.u32 %v1384_v63, %v1381_v54  ;;  %v1377_v27 = vrot.slane %v3895_v62, 4  ;;  %v2726_v62 = vld [vmem:[%s4355_s3 + $0x40] sm:$0xff]  }
 0x163   : > { %1061 = vrot.lane.b32.xlu1 %v1042_v41, %s2760_s25  ;;  %v1149_v44 = vpop.permute.xlu0 %1148  ;;  %v1490_v52 = vsel %vm3225_vm3, %v1488_v9, %v1489_v37  ;;  %v1493_v39 = vsel %vm3225_vm3, %v1491_v32, %v1492_v33  ;;  %v1395_v45 = vor.u32 %v1394_v6, %v1391_v28  ;;  %v1583_v41 = vrot.slane %v1544_v34, 6  ;;  %v4592_v63 = vld [vmem:[#allocation23_spill] sm:$0xff] }
 0x164   : > { %1763 = vrot.lane.b32.xlu0 %v1720_v38, %s2762_s27  ;;  %2029 = vmatpush1.bf16.msra.mxu1 %v2723_v49  ;;  %v1743_v18 = vshrl.u32 %v1639_v58, 16  ;;  %v1387_v60 = vrot.slane %v1385_v46, 4  ;;  %v1735_v49 = vrot.slane %v1733_v21, 6  ;;  %v1738_v17 = vrot.slane %v1736_v10, 7 }
 0x165   : > { %2030 = vmatprep.subr.bf16.mxu1 %v2763_v48  ;;  %v1746_v22 = vshll.u32 %v1639_v58, 16  ;;  %vm1264_vm15 = vcmask 519552   ;;  %v1585_v30 = vrot.slane %v1583_v41, 4  ;;  %v1586_v38 = vrot.slane %v1545_v11, 6 }
 0x166   : > { %v4067_v61 = vpop.permute.xlu1 %1500  ;;  %v1582_v15 = vrot.slane %v1580_v4, 4  ;;  %v1396_v59 = vsel %vm3366_vm6, %v1387_v60, %v1395_v45  ;;  %v1745_v35 = vrot.slane %v1743_v18, 6  ;;  %v1731_v16 = vrot.slane %v4041_v51, 4 }
 0x167   : > { %1765 = vrot.lane.b32.xlu1 %v1730_v0, %s2762_s27  ;;  %v1748_v13 = vrot.slane %v1746_v22, 7  ;;  %v1587_v4 = vsel %vm3225_vm3, %v1585_v30, %v1586_v38  ;;  %vm1781_vm7 = vcmask 1044352   ;;  %vm2002_vm9 = vcmask 130048  }
 0x168   : > { %1250 = vrot.lane.b32.xlu0 %v1230_v50, %s2758_s23  ;;  %2031 = vmatpush1.bf16.msra.mxu1 %v2724_v42  ;;  %v1584_v25 = vsel %vm3225_vm3, %v1582_v15, %v1583_v41  ;;  %vm1427_vm3 = vcmask 650752   ;;  %vm4595_vm11 = vmmov 0  }
 0x169   : > { %2032 = vmatprep.subr.bf16.mxu1 %v2763_v48  ;;  %v1044_v47 = vpop.permute.xlu0 %1043  ;;  %v1749_v55 = vor.u32 %v1748_v13, %v1745_v35  ;;  %v2733_v35 = vld [vmem:[#allocation3 + $0x24] ss:$8 sps:$4 sm:$0xff]  }
 0x16a   : > { %1074 = vst.msk [vmem:[#allocation3] sm:$0xf] %vm1073_vm4, %v1044_v47 }
 0x16b   : > { %1252 = vrot.lane.b32.xlu1 %v1233_v1, %s2758_s23  ;;  %1171 = vst.msk [vmem:[#allocation3] sm:$0xf] %vm1170_vm0, %v4033_v12  ;;  %v1143_v24 = vpop.permute.xlu1 %1142  ;;  %v1386_v12 = vsel %vm3366_vm6, %v1377_v27, %v1385_v46  ;;  %vm1524_vm6 = vcmask 781952  }
 0x16c   : > { %1510 = vrot.lane.b32.xlu0 %v1490_v52, %s2759_s24  ;;  %2033 = vmatpush1.bf16.msra.mxu1 %v2725_v7 }
 0x16d   : > { %2048 = vmatprep.subr.bf16.mxu1 %v2763_v48  ;;  %v1052_v8 = vpop.permute.xlu0 %1051  ;;  %v1739_v48 = vor.u32 %v1738_v17, %v1735_v49  ;;  %v2729_v49 = vld [vmem:[#allocation3 + $0x4] ss:$8 sps:$4 sm:$0xff]  }
 0x16e   : > { %1078 = vst.msk [vmem:[#allocation3 + $0x20] sm:$0xf] %vm1073_vm4, %v1052_v8  ;;  %2539 = vmatprep.mubr.msk.bf16.mxu1 %vm2002_vm9, %v2729_v49 }
 0x16f   : > { %1512 = vrot.lane.b32.xlu1 %v1493_v39, %s2759_s24  ;;  %1175 = vst.msk [vmem:[#allocation3 + $0x20] sm:$0xf] %vm1170_vm0, %v1149_v44  ;;  %v1741_v44 = vrot.slane %v1739_v48, 4  ;;  %v1740_v37 = vsel %vm3408_vm5, %v1731_v16, %v1739_v48 }
 0x170   : > { %1413 = vrot.lane.b32.xlu0 %v1386_v12, %s2761_s26  ;;  %2049 = vmatpush2.bf16.msra.mxu1 %v2726_v62 }
 0x171   : > { %v1750_v26 = vsel %vm3408_vm5, %v1741_v44, %v1749_v55  ;;  %vm1618_vm5 = vcmask 913152  }
 0x172   : > { %v1235_v56 = vpop.permute.xlu0 %1234  ;;  %v4102_v0 = vpop.permute.xlu1 %1403 }
 0x173   : > { %1415 = vrot.lane.b32.xlu1 %v1396_v59, %s2761_s26  ;;  %1265 = vst.msk [vmem:[#allocation3] sm:$0xf] %vm1264_vm15, %v1235_v56 }
 0x174   : > { %1604 = vrot.lane.b32.xlu0 %v1584_v25, %s2757_s22 }
 0x176   : > { %v1495_v53 = vpop.permute.xlu0 %1494 }
 0x177   : > { %1606 = vrot.lane.b32.xlu1 %v1587_v4, %s2757_s22 }
 0x178   : > { %v4111_v42 = vpop.permute.xlu1 %1594  ;;  %1767 = vrot.lane.b32.xlu0 %v1740_v37, %s2762_s27 }
 0x17a   : > { %v4119_v5 = vpop.permute.xlu0 %1755 }
 0x17b   : > { %1769 = vrot.lane.b32.xlu1 %v1750_v26, %s2762_s27 }
 0x17c   : > { %v1151_v51 = vpop.permute.xlu1 %1150 }
 0x17e   : > { %v1243_v33 = vpop.permute.xlu0 %1242 }
 0x17f   : > { %2311 = vrot.lane.b32.xlu1 %v3145_v2, %s2762_s27  ;;  %1269 = vst.msk [vmem:[#allocation3 + $0x20] sm:$0xf] %vm1264_vm15, %v1243_v33 }
 0x180   : > { %v1054_v3 = vpop.permute.xlu1 %1053 }
 0x181   : > { %1079 = vst.msk [vmem:[#allocation3 + $0x28] sm:$0xf] %vm1073_vm4, %v1054_v3 }
 0x182   : > { %1176 = vst.msk [vmem:[#allocation3 + $0x28] sm:$0xf] %vm1170_vm0, %v1151_v51  ;;  %v1503_v23 = vpop.permute.xlu0 %1502  ;;  %v2735_v51 = vld [vmem:[#allocation3 + $0x34] ss:$8 sps:$4 sm:$0xff]  }
 0x183   : > { %2313 = vrot.lane.b32.xlu1 %v3239_v19, %s2762_s27 }
 0x185   : > { %v1237_v9 = vpop.permute.xlu1 %1236 }
 0x186   : > { %v1046_v54 = vpop.permute.xlu0 %1045 }
 0x187   : > { %2315 = vrot.lane.b32.xlu1 %v3873_v20, %s2762_s27  ;;  %1075 = vst.msk [vmem:[#allocation3 + $0x8] sm:$0xf] %vm1073_vm4, %v1046_v54  ;;  %v4593_v20 = vld [vmem:[#allocation24_spill] sm:$0xff] }
 0x188   : > { %1172 = vst.msk [vmem:[#allocation3 + $0x8] sm:$0xf] %vm1170_vm0, %v1143_v24 }
 0x189   : > { %v1497_v2 = vpop.permute.xlu1 %1496  ;;  %1266 = vst.msk [vmem:[#allocation3 + $0x8] sm:$0xf] %vm1264_vm15, %v1237_v9 }
 0x18a   : > { %v1398_v50 = vpop.permute.xlu0 %1397 }
 0x18b   : > { %2317 = vrot.lane.b32.xlu1 %v4592_v63, %s2762_s27  ;;  %1428 = vst.msk [vmem:[#allocation3] sm:$0xf] %vm1427_vm3, %v1398_v50  ;;  %v2737_v50 = vld [vmem:[#allocation3 + $0x44] ss:$8 sps:$4 sm:$0xff]  }
 0x18c   : > { %1525 = vst.msk [vmem:[#allocation3] sm:$0xf] %vm1524_vm6, %v1495_v53 }
 0x18d   : > { %v1758_v19 = vpop.permute.xlu1 %1757 }
 0x18e   : > { %v1589_v32 = vpop.permute.xlu0 %1588 }
 0x18f   : > { %2319 = vrot.lane.b32.xlu1 %v4593_v20, %s2762_s27  ;;  %1619 = vst.msk [vmem:[#allocation3] sm:$0xf] %vm1618_vm5, %v1589_v32  ;;  %v2740_v20 = vld [vmem:[%s4357_s5] sm:$0xff]  }
 0x190   : > { %2636 = vmatpush3.bf16.msra.mxu0 %v2740_v20  ;;  %v2519_v32 = vld [vmem:[%s4356_s4] ss:$0 sm:$0xff]  ;;  %v4599_v20 = vld [vmem:[#allocation4_spill] sm:$0xff] }
 0x191   : > { %v1245_v28 = vpop.permute.xlu1 %1244  ;;  %vm555_vm10 = vcmp.lt.f32.partialorder %v4599_v20, 80.0 }
 0x192   : > { %1270 = vst.msk [vmem:[#allocation3 + $0x28] sm:$0xf] %vm1264_vm15, %v1245_v28  ;;  %v1145_v6 = vpop.permute.xlu0 %1144 }
 0x193   : > { %2321 = vrot.lane.b32.xlu1 %v3883_v14, %s2762_s27 }
 0x195   : > { %v1505_v34 = vpop.permute.xlu1 %1504 }
 0x196   : > { %v1406_v1 = vpop.permute.xlu0 %1405 }
 0x197   : > { %2323 = vrot.lane.b32.xlu1 %v3902_v36, %s2762_s27  ;;  %1432 = vst.msk [vmem:[#allocation3 + $0x20] sm:$0xf] %vm1427_vm3, %v1406_v1 }
 0x198   : > { %1529 = vst.msk [vmem:[#allocation3 + $0x20] sm:$0xf] %vm1524_vm6, %v1503_v23 }
 0x199   : > { %v1591_v58 = vpop.permute.xlu1 %1590 }
 0x19a   : > { %v1597_v21 = vpop.permute.xlu0 %1596 }
 0x19b   : > { %2325 = vrot.lane.b32.xlu1 %v3909_v29, %s2762_s27  ;;  %1623 = vst.msk [vmem:[#allocation3 + $0x20] sm:$0xf] %vm1618_vm5, %v1597_v21 }
 0x19d   : > { %v1147_v10 = vpop.permute.xlu1 %1146 }
 0x19e   : > { %v1153_v14 = vpop.permute.xlu0 %1152 }
 0x19f   : > { %2329 = vrot.lane.b32.xlu1 %v3916_v43, %s2762_s27 }
 0x1a1   : > { %v1400_v7 = vpop.permute.xlu1 %1399 }
 0x1a2   : > { %1429 = vst.msk [vmem:[#allocation3 + $0x8] sm:$0xf] %vm1427_vm3, %v1400_v7  ;;  %v1048_v36 = vpop.permute.xlu0 %1047 }
 0x1a3   : > { %1526 = vst.msk [vmem:[#allocation3 + $0x8] sm:$0xf] %vm1524_vm6, %v1497_v2 }
 0x1a4   : > { %1620 = vst.msk [vmem:[#allocation3 + $0x8] sm:$0xf] %vm1618_vm5, %v1591_v58 }
 0x1a5   : > { %v1408_v47 = vpop.permute.xlu1 %1407  ;;  %1076 = vst.msk [vmem:[#allocation3 + $0x10] sm:$0xf] %vm1073_vm4, %v1048_v36  ;;  %v4594_v36 = vmov 0.0  }
 0x1a6   : > { %1433 = vst.msk [vmem:[#allocation3 + $0x28] sm:$0xf] %vm1427_vm3, %v1408_v47  ;;  %v1239_v29 = vpop.permute.xlu0 %1238 }
 0x1a7   : > { %1173 = vst.msk [vmem:[#allocation3 + $0x10] sm:$0xf] %vm1170_vm0, %v1145_v6 }
 0x1a8   : > { %1530 = vst.msk [vmem:[#allocation3 + $0x28] sm:$0xf] %vm1524_vm6, %v1505_v34 }
 0x1a9   : > { %v1599_v43 = vpop.permute.xlu1 %1598  ;;  %1267 = vst.msk [vmem:[#allocation3 + $0x10] sm:$0xf] %vm1264_vm15, %v1239_v29 }
 0x1aa   : > { %1624 = vst.msk [vmem:[#allocation3 + $0x28] sm:$0xf] %vm1618_vm5, %v1599_v43  ;;  %v1499_v52 = vpop.permute.xlu0 %1498 }
 0x1ad   : > { %v1155_v46 = vpop.permute.xlu1 %1154 }
 0x1ae   : > { %v1056_v27 = vpop.permute.xlu0 %1055 }
 0x1af   : > { %1080 = vst.msk [vmem:[#allocation3 + $0x30] sm:$0xf] %vm1073_vm4, %v1056_v27 }
 0x1b0   : > { %1177 = vst.msk [vmem:[#allocation3 + $0x30] sm:$0xf] %vm1170_vm0, %v1153_v14 }
 0x1b1   : > { %v1754_v39 = vpop.permute.xlu1 %1753 }
 0x1b2   : > { %1783 = vst.msk [vmem:[#allocation3 + $0x8] sm:$0xf] %vm1781_vm7, %v1754_v39  ;;  %v1752_v45 = vpop.permute.xlu0 %1751 }
 0x1b3   : > { %1782 = vst.msk [vmem:[#allocation3] sm:$0xf] %vm1781_vm7, %v1752_v45 }
 0x1b5   : > { %v1050_v11 = vpop.permute.xlu1 %1049 }
 0x1b6   : > { %1077 = vst.msk [vmem:[#allocation3 + $0x18] sm:$0xf] %vm1073_vm4, %v1050_v11  ;;  %v1760_v41 = vpop.permute.xlu0 %1759 }
 0x1b7   : > { %1174 = vst.msk [vmem:[#allocation3 + $0x18] sm:$0xf] %vm1170_vm0, %v1147_v10 }
 0x1b8   : > { %1268 = vst.msk [vmem:[#allocation3 + $0x18] sm:$0xf] %vm1264_vm15, %v4050_v31 }
 0x1b9   : > { %1431 = vst.msk [vmem:[#allocation3 + $0x18] sm:$0xf] %vm1427_vm3, %v4102_v0  ;;  %v1058_v18 = vpop.permute.xlu1 %1057 }
 0x1ba   : > { %1786 = vst.msk [vmem:[#allocation3 + $0x20] sm:$0xf] %vm1781_vm7, %v1760_v41  ;;  %v1247_v31 = vpop.permute.xlu0 %1246  ;;  %v2727_v60 = vld [vmem:[#allocation3] ss:$8 sps:$4 sm:$0xff]  }
 0x1bb   : > { %1528 = vst.msk [vmem:[#allocation3 + $0x18] sm:$0xf] %vm1524_vm6, %v4067_v61  ;;  %2051 = vmatmul.mubr.bf16.vlgmr.msra.gmra.mxu1 %v2727_v60 }
 0x1bc   : > { %1081 = vst.msk [vmem:[#allocation3 + $0x38] sm:$0xf] %vm1073_vm4, %v1058_v18 }
 0x1bd   : > { %1622 = vst.msk [vmem:[#allocation3 + $0x18] sm:$0xf] %vm1618_vm5, %v4111_v42  ;;  %v1762_v17 = vpop.permute.xlu1 %1761 }
 0x1be   : > { %1178 = vst.msk [vmem:[#allocation3 + $0x38] sm:$0xf] %vm1170_vm0, %v1155_v46  ;;  %v1507_v61 = vpop.permute.xlu0 %1506 }
 0x1bf   : > { %1785 = vst.msk [vmem:[#allocation3 + $0x18] sm:$0xf] %vm1781_vm7, %v1758_v19  ;;  %1787 = vst.msk [vmem:[#allocation3 + $0x28] sm:$0xf] %vm1781_vm7, %v1762_v17 }
 0x1c0   : > { %1271 = vst.msk [vmem:[#allocation3 + $0x30] sm:$0xf] %vm1264_vm15, %v1247_v31 }
 0x1c1   : > { %v1249_v22 = vpop.permute.xlu1 %1248  ;;  %v1872_v25 = vld [vmem:[#allocation3 + $0x20] sm:$0xff] }
 0x1c2   : > { %1272 = vst.msk [vmem:[#allocation3 + $0x38] sm:$0xf] %vm1264_vm15, %v1249_v22  ;;  %v1402_v62 = vpop.permute.xlu0 %1401 }
 0x1c3   : > { %1430 = vst.msk [vmem:[#allocation3 + $0x10] sm:$0xf] %vm1427_vm3, %v1402_v62 }
 0x1c4   : > { %1527 = vst.msk [vmem:[#allocation3 + $0x10] sm:$0xf] %vm1524_vm6, %v1499_v52 }
 0x1c5   : > { %v1509_v24 = vpop.permute.xlu1 %1508  ;;  %1621 = vst.msk [vmem:[#allocation3 + $0x10] sm:$0xf] %vm1618_vm5, %v4039_v57  ;;  %v2730_v57 = vld [vmem:[#allocation3 + $0x14] ss:$8 sps:$4 sm:$0xff]  }
 0x1c6   : > { %1784 = vst.msk [vmem:[#allocation3 + $0x10] sm:$0xf] %vm1781_vm7, %v4119_v5  ;;  %v1410_v8 = vpop.permute.xlu0 %1409  ;;  %2540 = vmatprep.mubr.msk.bf16.mxu1 %vm2002_vm9, %v2730_v57  ;;  %v1873_v0 = vld [vmem:[#allocation3 + $0x28] sm:$0xff] }
 0x1c7   : > { %1434 = vst.msk [vmem:[#allocation3 + $0x30] sm:$0xf] %vm1427_vm3, %v1410_v8  ;;  %v2524_v4 = vcombine.low %v1872_v25, %v1873_v0 }
 0x1c8   : > { %1531 = vst.msk [vmem:[#allocation3 + $0x30] sm:$0xf] %vm1524_vm6, %v1507_v61 }
 0x1c9   : > { %v1412_v12 = vpop.permute.xlu1 %1411 }
 0x1ca   : > { %1435 = vst.msk [vmem:[#allocation3 + $0x38] sm:$0xf] %vm1427_vm3, %v1412_v12  ;;  %v1601_v30 = vpop.permute.xlu0 %1600 }
 0x1cb   : > { %1532 = vst.msk [vmem:[#allocation3 + $0x38] sm:$0xf] %vm1524_vm6, %v1509_v24 }
 0x1cc   : > { %1625 = vst.msk [vmem:[#allocation3 + $0x30] sm:$0xf] %vm1618_vm5, %v1601_v30 }
 0x1cd   : > { %v1603_v38 = vpop.permute.xlu1 %1602  ;;  %v2732_v15 = vld [vmem:[#allocation3 + $0x10] ss:$8 sps:$4 sm:$0xff]  }
 0x1ce   : > { %1626 = vst.msk [vmem:[#allocation3 + $0x38] sm:$0xf] %vm1618_vm5, %v1603_v38  ;;  %v1157_v59 = vpop.permute.xlu0 %1156  ;;  %2059 = vmatmul.mubr.bf16.gmra.mxu1 %v2732_v15 }
 0x1cf   : > { %2541 = vmatprep.mubr.msk.bf16.mxu1 %vm2002_vm9, %v2733_v35 }
 0x1d1   : > { %v1159_v48 = vpop.permute.xlu1 %1158 }
 0x1d2   : > { %v1060_v13 = vpop.permute.xlu0 %1059 }
 0x1d3   : > { %1082 = vst.msk [vmem:[#allocation3 + $0x40] sm:$0xf] %vm1073_vm4, %v1060_v13 }
 0x1d4   : > { %1179 = vst.msk [vmem:[#allocation3 + $0x40] sm:$0xf] %vm1170_vm0, %v1157_v59 }
 0x1d5   : > { %v1062_v56 = vpop.permute.xlu1 %1061 }
 0x1d6   : > { %1083 = vst.msk [vmem:[#allocation3 + $0x48] sm:$0xf] %vm1073_vm4, %v1062_v56  ;;  %v1764_v16 = vpop.permute.xlu0 %1763  ;;  %2067 = vmatmul.mubr.bf16.gmra.mxu1 %v2524_v4 }
 0x1d7   : > { %1180 = vst.msk [vmem:[#allocation3 + $0x48] sm:$0xf] %vm1170_vm0, %v1159_v48  ;;  %2542 = vmatprep.mubr.msk.bf16.mxu1 %vm2002_vm9, %v2735_v51 }
 0x1d8   : > { %1788 = vst.msk [vmem:[#allocation3 + $0x30] sm:$0xf] %vm1781_vm7, %v1764_v16 }
 0x1d9   : > { %v1766_v44 = vpop.permute.xlu1 %1765 }
 0x1da   : > { %1789 = vst.msk [vmem:[#allocation3 + $0x38] sm:$0xf] %vm1781_vm7, %v1766_v44  ;;  %v1251_v55 = vpop.permute.xlu0 %1250 }
 0x1db   : > { %1273 = vst.msk [vmem:[#allocation3 + $0x40] sm:$0xf] %vm1264_vm15, %v1251_v55 }
 0x1dd   : > { %v1253_v53 = vpop.permute.xlu1 %1252 }
 0x1de   : > { %1274 = vst.msk [vmem:[#allocation3 + $0x48] sm:$0xf] %vm1264_vm15, %v1253_v53  ;;  %v1511_v42 = vpop.permute.xlu0 %1510 }
 0x1df   : > { %v1874_v37 = vld [vmem:[#allocation3 + $0x30] sm:$0xff] }
 0x1e1   : > { %v1513_v26 = vpop.permute.xlu1 %1512  ;;  %v1875_v5 = vld [vmem:[#allocation3 + $0x38] sm:$0xff] }
 0x1e2   : > { %v2526_v33 = vcombine.low %v1874_v37, %v1875_v5  ;;  %v1414_v3 = vpop.permute.xlu0 %1413 }
 0x1e3   : > { %1436 = vst.msk [vmem:[#allocation3 + $0x40] sm:$0xf] %vm1427_vm3, %v1414_v3 }
 0x1e4   : > { %2075 = vmatmul.mubr.bf16.gmra.mxu1 %v2526_v33  ;;  %1533 = vst.msk [vmem:[#allocation3 + $0x40] sm:$0xf] %vm1524_vm6, %v1511_v42 }
 0x1e5   : > { %v1416_v23 = vpop.permute.xlu1 %1415  ;;  %2543 = vmatprep.mubr.msk.bf16.mxu1 %vm2002_vm9, %v2737_v50  ;;  %v4597_v50 = vld [vmem:[#allocation6_spill] sm:$0xff] }
 0x1e6   : > { %1437 = vst.msk [vmem:[#allocation3 + $0x48] sm:$0xf] %vm1427_vm3, %v1416_v23  ;;  %v1605_v9 = vpop.permute.xlu0 %1604  ;;  %vm556_vm12 = vcmp.lt.f32.partialorder %v4597_v50, 80.0 }
 0x1e7   : > { %1534 = vst.msk [vmem:[#allocation3 + $0x48] sm:$0xf] %vm1524_vm6, %v1513_v26 }
 0x1e8   : > { %1627 = vst.msk [vmem:[#allocation3 + $0x40] sm:$0xf] %vm1618_vm5, %v1605_v9 }
 0x1e9   : > { %v1607_v54 = vpop.permute.xlu1 %1606 }
 0x1ea   : > { %1628 = vst.msk [vmem:[#allocation3 + $0x48] sm:$0xf] %vm1618_vm5, %v1607_v54  ;;  %v1768_v2 = vpop.permute.xlu0 %1767 }
 0x1eb   : > { %1790 = vst.msk [vmem:[#allocation3 + $0x40] sm:$0xf] %vm1781_vm7, %v1768_v2 }
 0x1ed   : > { %v1770_v63 = vpop.permute.xlu1 %1769 }
 0x1ee   : > { %1791 = vst.msk [vmem:[#allocation3 + $0x48] sm:$0xf] %vm1781_vm7, %v1770_v63  ;;  %v4596_v63 = vld [vmem:[#allocation15_spill] sm:$0xff] }
 0x1ef   : > { %vm546_vm8 = vcmp.lt.f32.partialorder %v4596_v63, 8.0 }
 0x1f0   : > { %vm566_vm13 = vmand %vm546_vm8, %vm556_vm12 }
 0x1f5   : > { %v2739_v19 = vld [vmem:[#allocation3 + $0x40] ss:$8 sps:$4 sm:$0xff]  }
 0x1f6   : > { %2083 = vmatmul.mubr.bf16.gmra.mxu1 %v2739_v19  ;;  %v4598_v19 = vld [vmem:[#allocation13_spill] sm:$0xff] }
 0x1f7   : > { %vm545_vm1 = vcmp.lt.f32.partialorder %v4598_v19, 8.0 }
 0x1f8   : > { %vm565_vm4 = vmand %vm545_vm1, %vm555_vm10 }
 0x27b   : > { %v2052_v28 = vpop.f32.mrf.mxu1 }
 0x27c   : > { %v2053_v34 = vadd.f32 %v2519_v32, %v2052_v28  ;;  %v4601_v28 = vld [vmem:[#allocation8_spill] sm:$0xff] }
 0x27d   : > { %v2054_v6 = vpop.f32.mrf.mxu1  ;;  %vm557_vm2 = vcmp.lt.f32.partialorder %v4601_v28, 80.0 }
 0x27e   : > { %v2091_v10 = vmax.f32 %v2053_v34, 0.0  ;;  %v4243_v34 = vld [vmem:[%s4358_s6] ss:$0 sm:$0xff] }
 0x27f   : > { %v2055_v1 = vpop.f32.mrf.mxu1 }
 0x280   : > { %v2056_v58 = vadd.f32 %v2519_v32, %v2055_v1  ;;  %v4602_v1 = vld [vmem:[#allocation19_spill] sm:$0xff] }
 0x281   : > { %v2057_v21 = vpop.f32.mrf.mxu1  ;;  %vm548_vm0 = vcmp.lt.f32.partialorder %v4602_v1, 8.0 }
 0x282   : > { %v2092_v14 = vmax.f32 %v2056_v58, 0.0  ;;  %v4603_v58 = vld [vmem:[#allocation10_spill] sm:$0xff] }
 0x283   : > { %vm558_vm15 = vcmp.lt.f32.partialorder %v4603_v58, 80.0 }
 0x284   : > { %v2101_v7 = vpack.c.bf16 %v2092_v14, %v2091_v10  ;;  %v2474_v14 = vsel %vm566_vm13, 1.0, %v4594_v36  ;;  %vm568_vm7 = vmand %vm548_vm0, %vm558_vm15 }
 0x286   : > { %2638 = vmatmul.mubr.msk.bf16.vlgmr.msra.gmra.mxu0 %vm2002_vm9, %v2101_v7  ;;  %v4604_v7 = vld [vmem:[#allocation14_spill] sm:$0xff] }
 0x287   : > { %2641 = vmatprep.mubr.msk.bf16.mxu0 %vm4595_vm11, %v4594_v36  ;;  %vm549_vm6 = vcmp.lt.f32.partialorder %v4604_v7, 8.0 }
 0x28e   : > { %v2060_v47 = vpop.f32.mrf.mxu1 }
 0x28f   : > { %v2061_v43 = vadd.f32 %v2519_v32, %v2060_v47  ;;  %v4605_v47 = vld [vmem:[#allocation5_spill] sm:$0xff] }
 0x290   : > { %v2062_v29 = vpop.f32.mrf.mxu1  ;;  %vm559_vm5 = vcmp.lt.f32.partialorder %v4605_v47, 80.0 }
 0x291   : > { %v2093_v39 = vmax.f32 %v2061_v43, 0.0  ;;  %vm569_vm8 = vmand %vm549_vm6, %vm559_vm5 }
 0x292   : > { %v2063_v52 = vpop.f32.mrf.mxu1 }
 0x293   : > { %v2064_v46 = vadd.f32 %v2519_v32, %v2063_v52 }
 0x294   : > { %v2065_v27 = vpop.f32.mrf.mxu1 }
 0x295   : > { %v2094_v45 = vmax.f32 %v2064_v46, 0.0  ;;  %v2473_v46 = vsel %vm565_vm4, 1.0, %v4594_v36 }
 0x296   : > { %v2068_v11 = vpop.f32.mrf.mxu1 }
 0x297   : > { %v2102_v41 = vpack.c.bf16 %v2094_v45, %v2093_v39  ;;  %v2069_v31 = vadd.f32 %v2519_v32, %v2068_v11  ;;  %v4606_v39 = vld [vmem:[#allocation16_spill] sm:$0xff]  ;;  %v4607_v45 = vld [vmem:[#allocation7_spill] sm:$0xff] }
 0x298   : > { %v2070_v18 = vpop.f32.mrf.mxu1 }
 0x299   : > { %2642 = vmatmul.mubr.msk.bf16.gmra.mxu0 %vm2002_vm9, %v2102_v41  ;;  %v2095_v61 = vmax.f32 %v2069_v31, 0.0  ;;  %v2476_v31 = vsel %vm568_vm7, 1.0, %v4594_v36 }
 0x29a   : > { %v2071_v60 = vpop.f32.mrf.mxu1  ;;  %2645 = vmatprep.mubr.msk.bf16.mxu0 %vm4595_vm11, %v4594_v36 }
 0x29b   : > { %v2072_v49 = vadd.f32 %v2519_v32, %v2071_v60  ;;  %v4608_v60 = vld [vmem:[#allocation18_spill] sm:$0xff] }
 0x29c   : > { %v2073_v17 = vpop.f32.mrf.mxu1  ;;  %vm551_vm12 = vcmp.lt.f32.partialorder %v4608_v60, 8.0 }
 0x29d   : > { %v2096_v22 = vmax.f32 %v2072_v49, 0.0  ;;  %v4609_v49 = vld [vmem:[#allocation9_spill] sm:$0xff] }
 0x29e   : > { %vm561_vm1 = vcmp.lt.f32.partialorder %v4609_v49, 80.0 }
 0x29f   : > { %v2103_v62 = vpack.c.bf16 %v2096_v22, %v2095_v61  ;;  %vm571_vm4 = vmand %vm551_vm12, %vm561_vm1 }
 0x2a1   : > { %2646 = vmatmul.mubr.msk.bf16.gmra.mxu0 %vm2002_vm9, %v2103_v62  ;;  %v2477_v62 = vsel %vm569_vm8, 1.0, %v4594_v36 }
 0x2a2   : > { %2649 = vmatprep.mubr.msk.bf16.mxu0 %vm4595_vm11, %v4594_v36 }
 0x2a4   : > { %v2076_v24 = vpop.f32.mrf.mxu1 }
 0x2a5   : > { %v2077_v12 = vadd.f32 %v2519_v32, %v2076_v24  ;;  %v4610_v24 = vld [vmem:[#allocation20_spill] sm:$0xff] }
 0x2a6   : > { %v2078_v8 = vpop.f32.mrf.mxu1 }
 0x2a7   : > { %v2097_v15 = vmax.f32 %v2077_v12, 0.0  ;;  %v4611_v8 = vld [vmem:[#allocation11_spill] sm:$0xff] }
 0x2a8   : > { %v2079_v30 = vpop.f32.mrf.mxu1  ;;  %vm562_vm13 = vcmp.lt.f32.partialorder %v4611_v8, 80.0 }
 0x2a9   : > { %v2080_v38 = vadd.f32 %v2519_v32, %v2079_v30 }
 0x2aa   : > { %v2081_v57 = vpop.f32.mrf.mxu1 }
 0x2ab   : > { %v2098_v59 = vmax.f32 %v2080_v38, 0.0 }
 0x2ad   : > { %v2104_v48 = vpack.c.bf16 %v2098_v59, %v2097_v15 }
 0x2af   : > { %2650 = vmatmul.mubr.msk.bf16.gmra.mxu0 %vm2002_vm9, %v2104_v48 }
 0x2b0   : > { %2653 = vmatprep.mubr.msk.bf16.mxu0 %vm4595_vm11, %v4594_v36  ;;  %vm560_vm11 = vcmp.lt.f32.partialorder %v4607_v45, 80.0 }
 0x2b6   : > { %v2084_v35 = vpop.f32.mrf.mxu1 }
 0x2b7   : > { %v2085_v56 = vadd.f32 %v2519_v32, %v2084_v35 }
 0x2b8   : > { %v2086_v13 = vpop.f32.mrf.mxu1 }
 0x2b9   : > { %v2099_v4 = vmax.f32 %v2085_v56, 0.0  ;;  %v2479_v56 = vsel %vm571_vm4, 1.0, %v4594_v36 }
 0x2ba   : > { %v2087_v0 = vpop.f32.mrf.mxu1 }
 0x2bb   : > { %v2088_v25 = vadd.f32 %v2519_v32, %v2087_v0  ;;  %v4600_v32 = vld [vmem:[#allocation17_spill] sm:$0xff]  ;;  %v4612_v0 = vld [vmem:[#allocation22_spill] sm:$0xff] }
 0x2bc   : > { %v2089_v16 = vpop.f32.mrf.mxu1  ;;  %vm547_vm14 = vcmp.lt.f32.partialorder %v4600_v32, 8.0  ;;  %vm553_vm15 = vcmp.lt.f32.partialorder %v4612_v0, 8.0 }
 0x2bd   : > { %v2100_v44 = vmax.f32 %v2088_v25, 0.0  ;;  %vm567_vm3 = vmand %vm547_vm14, %vm557_vm2  ;;  %vm2219_vm14 = vcmask 523264   ;;  %vm552_vm2 = vcmp.lt.f32.partialorder %v4610_v24, 8.0  ;;  %v4613_v25 = vld [vmem:[#allocation12_spill] sm:$0xff] }
 0x2be   : > { %v2475_v27 = vsel %vm567_vm3, 1.0, %v4594_v36  ;;  %vm572_vm0 = vmand %vm552_vm2, %vm562_vm13  ;;  %vm563_vm3 = vcmp.lt.f32.partialorder %v4613_v25, 80.0 }
 0x2bf   : > { %v2105_v55 = vpack.c.bf16 %v2100_v44, %v2099_v4  ;;  %vm573_vm6 = vmand %vm553_vm15, %vm563_vm3 }
 0x2c1   : > { %2654 = vmatmul.mubr.msk.bf16.gmra.mxu0 %vm2002_vm9, %v2105_v55  ;;  %vm550_vm9 = vcmp.lt.f32.partialorder %v4606_v39, 8.0 }
 0x2c2   : > { %vm570_vm10 = vmand %vm550_vm9, %vm560_vm11  ;;  %vm2248_vm11 = vcmask 519168  }
 0x2c3   : > { %v2478_v57 = vsel %vm570_vm10, 1.0, %v4594_v36 }
 0x346   : > { %v2170_v53 = vpop.f32.mrf.mxu0 }
 0x347   : > { %v4254_v43 = vadd.f32 %v4243_v34, %v2170_v53  ;;  %v2480_v53 = vsel %vm572_vm0, 1.0, %v4594_v36 }
 0x348   : > { %v2639_v42 = vpop.f32.mrf.mxu0 }
 0x349   : > { %v2209_v17 = vmul.f32 %v2473_v46, %v4254_v43 }
 0x34a   : > { %v2173_v37 = vpop.f32.mrf.mxu0 }
 0x34b   : > { %v4248_v10 = vadd.f32 %v4243_v34, %v2173_v37  ;;  %v2220_v15 = vsel %vm2219_vm14, %v2209_v17, 0.0 }
 0x34c   : > { %v2640_v26 = vpop.f32.mrf.mxu0 }
 0x34d   : > { %v2210_v41 = vmul.f32 %v2474_v14, %v4248_v10 }
 0x34f   : > { %v2221_v12 = vsel %vm2219_vm14, %v2210_v41, 0.0 }
 0x350   : > { %v2222_v13 = vadd.f32 %v2221_v12, %v2220_v15  ;;  %v2312_v12 = vpop.permute.xlu1 %2311 }
 0x359   : > { %v2178_v5 = vpop.f32.mrf.mxu0 }
 0x35a   : > { %v4257_v52 = vadd.f32 %v4243_v34, %v2178_v5  ;;  %v4614_v5 = vld [vmem:[#allocation25_spill] sm:$0xff] }
 0x35b   : > { %v2643_v51 = vpop.f32.mrf.mxu0  ;;  %vm554_vm5 = vcmp.lt.f32.partialorder %v4614_v5, 8.0 }
 0x35c   : > { %v2211_v61 = vmul.f32 %v2475_v27, %v4257_v52  ;;  %v4615_v51 = vld [vmem:[#allocation21_spill] sm:$0xff] }
 0x35d   : > { %v2181_v33 = vpop.f32.mrf.mxu0  ;;  %vm564_vm7 = vcmp.lt.f32.partialorder %v4615_v51, 80.0 }
 0x35e   : > { %v4265_v18 = vadd.f32 %v4243_v34, %v2181_v33  ;;  %v2223_v59 = vsel %vm2219_vm14, %v2211_v61, 0.0  ;;  %vm574_vm9 = vmand %vm554_vm5, %vm564_vm7  ;;  %v2253_v61 = vld [vmem:[%s4360_s8] sm:$0xf] }
 0x35f   : > { %v2644_v3 = vpop.f32.mrf.mxu0  ;;  %v2224_v55 = vadd.f32 %v2223_v59, %v2222_v13 }
 0x360   : > { %v2212_v30 = vmul.f32 %v2476_v31, %v4265_v18 }
 0x361   : > { %v2186_v23 = vpop.f32.mrf.mxu0 }
 0x362   : > { %v4273_v22 = vadd.f32 %v4243_v34, %v2186_v23  ;;  %v2225_v16 = vsel %vm2219_vm14, %v2212_v30, 0.0 }
 0x363   : > { %v2647_v9 = vpop.f32.mrf.mxu0  ;;  %v2226_v26 = vadd.f32 %v2225_v16, %v2224_v55 }
 0x364   : > { %v2213_v48 = vmul.f32 %v2477_v62, %v4273_v22  ;;  %v2481_v9 = vsel %vm573_vm6, 1.0, %v4594_v36 }
 0x365   : > { %v2189_v54 = vpop.f32.mrf.mxu0 }
 0x366   : > { %v4281_v38 = vadd.f32 %v4243_v34, %v2189_v54  ;;  %v2227_v42 = vsel %vm2219_vm14, %v2213_v48, 0.0  ;;  %v2314_v48 = vpop.permute.xlu1 %2313 }
 0x367   : > { %v2648_v2 = vpop.f32.mrf.mxu0  ;;  %v2228_v23 = vadd.f32 %v2227_v42, %v2226_v26 }
 0x368   : > { %v2214_v4 = vmul.f32 %v2478_v57, %v4281_v38 }
 0x36a   : > { %v2229_v33 = vsel %vm2219_vm14, %v2214_v4, 0.0  ;;  %v2316_v25 = vpop.permute.xlu1 %2315 }
 0x36b   : > { %v2230_v50 = vadd.f32 %v2229_v33, %v2228_v23 }
 0x36f   : > { %v2194_v6 = vpop.f32.mrf.mxu0 }
 0x370   : > { %v4288_v35 = vadd.f32 %v4243_v34, %v2194_v6  ;;  %v2482_v6 = vsel %vm574_vm9, 1.0, %v4594_v36  ;;  %v2246_v36 = vld [vmem:[%s4359_s7] sm:$0xf] }
 0x371   : > { %v2651_v21 = vpop.f32.mrf.mxu0 }
 0x372   : > { %v2215_v37 = vmul.f32 %v2479_v56, %v4288_v35 }
 0x373   : > { %v2197_v29 = vpop.f32.mrf.mxu0 }
 0x374   : > { %v4296_v44 = vadd.f32 %v4243_v34, %v2197_v29  ;;  %v2231_v2 = vsel %vm2219_vm14, %v2215_v37, 0.0 }
 0x375   : > { %v2652_v11 = vpop.f32.mrf.mxu0  ;;  %v2232_v28 = vadd.f32 %v2231_v2, %v2230_v50 }
 0x376   : > { %v2216_v3 = vmul.f32 %v2480_v53, %v4296_v44 }
 0x378   : > { %v2233_v20 = vsel %vm2219_vm14, %v2216_v3, 0.0 }
 0x379   : > { %v2234_v14 = vadd.f32 %v2233_v20, %v2232_v28 }
 0x381   : > { %v2202_v54 = vpop.f32.mrf.mxu0 }
 0x382   : > { %v4308_v63 = vadd.f32 %v4243_v34, %v2202_v54 }
 0x383   : > { %v2655_v19 = vpop.f32.mrf.mxu0 }
 0x384   : > { %v2217_v32 = vmul.f32 %v2481_v9, %v4308_v63 }
 0x385   : > { %v2205_v1 = vpop.f32.mrf.mxu0 }
 0x386   : > { %v2235_v58 = vsel %vm2219_vm14, %v2217_v32, 0.0  ;;  %v2206_v21 = vadd.f32 %v4243_v34, %v2205_v1 }
 0x387   : > { %v2656_v7 = vpop.f32.mrf.mxu0  ;;  %v2236_v29 = vadd.f32 %v2235_v58, %v2234_v14 }
 0x388   : > { %v2218_v47 = vmul.f32 %v2482_v6, %v2206_v21 }
 0x38a   : > { %v2237_v46 = vsel %vm2219_vm14, %v2218_v47, 0.0 }
 0x38b   : > { %v2238_v27 = vadd.f32 %v2237_v46, %v2236_v29 }
 0x38d   : > { %v2239_v39 = vrot.slane %v2238_v27, 4 }
 0x38f   : > { %v2240_v45 = vadd.f32 %v2239_v39, %v2238_v27 }
 0x391   : > { %v2241_v11 = vrot.slane %v2240_v45, 2 }
 0x393   : > { %v2242_v41 = vadd.f32 %v2241_v11, %v2240_v45 }
 0x395   : > { %v2243_v31 = vrot.slane %v2242_v41, 1 }
 0x397   : > { %v2244_v60 = vadd.f32 %v2243_v31, %v2242_v41 }
 0x399   : > { %v2245_v49 = vmul.f32 0.015625, %v2244_v60 }
 0x39b   : > { %v2247_v34 = vmul.f32 %v2246_v36, %v2245_v49 }
 0x39d   : > { %v2249_v17 = vsel %vm2248_vm11, %v2247_v34, 0.0 }
 0x39e   : > { %2250 = vadd.xlane.f32.xlu0 %v2249_v17 }
 0x3b4   : > { %2327 = vrot.lane.b32.xlu0 %v3988_v40, %s2762_s27  ;;  %v2318_v40 = vpop.permute.xlu1 %2317  ;;  %s2662_s27 = smul.u32 40, %s4617_s10 }
 0x3b6   : > { %s332_s20 = scalar_lea.vmem %s4361_s9, %s2662_s27 }
 0x3b8   : > { %v2320_v4 = vpop.permute.xlu1 %2319 }
 0x3bc   : > { %v2322_v42 = vpop.permute.xlu1 %2321 }
 0x3c0   : > { %v2324_v37 = vpop.permute.xlu1 %2323 }
 0x3c4   : > { %v2326_v26 = vpop.permute.xlu1 %2325 }
 0x3c8   : > { %v2330_v28 = vpop.permute.xlu1 %2329 }
 0x427   : > { %v2251_v62 = vpop.xlane.xlu0 %2250 }
 0x428   : > { %v2252_v24 = vmax.f32 %v2251_v62, 0.0 }
 0x42a   : > { %v2254_v8 = vmul.f32 %v2253_v61, %v2252_v24 }
 0x42b   : > { %v2328_v36 = vpop.permute.xlu0 %2327 }
 0x42c   : > { %v2255_v30 = vsel %vm2248_vm11, %v2254_v8, 0.0 }
 0x42d   : > { %v2256_v57 = vrot.slane %v2255_v30, 4 }
 0x42f   : > { %v2257_v15 = vadd.f32 %v2256_v57, %v2255_v30 }
 0x431   : > { %v2258_v59 = vrot.slane %v2257_v15, 2 }
 0x433   : > { %v2259_v13 = vadd.f32 %v2258_v59, %v2257_v15 }
 0x435   : > { %v2260_v56 = vrot.slane %v2259_v13, 1 }
 0x437   : > { %v2261_v0 = vadd.f32 %v2260_v56, %v2259_v13 }
 0x439   : > { %v2551_v16 = vmul.f32 -1.442695, %v2261_v0 }
 0x43b   : > { %2741 = vpow2.f32 %v2551_v16 }
 0x448   : > { %v2742_v55 = vpop.eup %2741 }
 0x449   : > { %v2265_v53 = vadd.f32 1.0, %v2742_v55 }
 0x44b   : > { %2743 = vrcp.f32 %v2265_v53 }
 0x458   : > { %v2744_v5 = vpop.eup %2743 }
 0x459   : > { %v2268_v51 = vmul.f32 %v2744_v5, %v4254_v43  ;;  %v2269_v33 = vmul.f32 %v2744_v5, %v4248_v10  ;;  %v2270_v3 = vmul.f32 %v2744_v5, %v4257_v52  ;;  %v2271_v23 = vmul.f32 %v2744_v5, %v4265_v18 }
 0x45a   : > { %v2272_v9 = vmul.f32 %v2744_v5, %v4273_v22  ;;  %v2273_v54 = vmul.f32 %v2744_v5, %v4281_v38  ;;  %v2274_v2 = vmul.f32 %v2744_v5, %v4288_v35  ;;  %v2275_v50 = vmul.f32 %v2744_v5, %v4296_v44 }
 0x45b   : > { %v2276_v19 = vmul.f32 %v2744_v5, %v4308_v63  ;;  %v2277_v20 = vmul.f32 %v2744_v5, %v2206_v21  ;;  %v2341_v32 = vadd.f32 %v2312_v12, %v2268_v51  ;;  %v2342_v43 = vadd.f32 %v2314_v48, %v2269_v33 }
 0x45c   : > { %v2343_v10 = vadd.f32 %v2316_v25, %v2270_v3  ;;  %v2344_v6 = vadd.f32 %v2318_v40, %v2271_v23  ;;  %v2345_v52 = vadd.f32 %v2320_v4, %v2272_v9  ;;  %v2346_v1 = vadd.f32 %v2322_v42, %v2273_v54 }
 0x45d   : > { %v2347_v18 = vadd.f32 %v2324_v37, %v2274_v2  ;;  %v2348_v58 = vadd.f32 %v2326_v26, %v2275_v50  ;;  %v2350_v22 = vadd.f32 %v2330_v28, %v2277_v20  ;;  %v2351_v14 = vmax.f32 %v2341_v32, 0.0 }
 0x45e   : > { %v2352_v38 = vmax.f32 %v2342_v43, 0.0  ;;  %v2353_v7 = vmax.f32 %v2343_v10, 0.0  ;;  %v2354_v35 = vmax.f32 %v2344_v6, 0.0  ;;  %v2355_v47 = vmax.f32 %v2345_v52, 0.0 }
 0x45f   : > { %v2356_v44 = vmax.f32 %v2346_v1, 0.0  ;;  %v2357_v63 = vmax.f32 %v2347_v18, 0.0  ;;  %v2358_v21 = vmax.f32 %v2348_v58, 0.0  ;;  %v2360_v29 = vmax.f32 %v2350_v22, 0.0 }
 0x460   : > { %v2578_v46 = vpack.c.bf16 %v2351_v14, %v2351_v14  ;;  %v2579_v27 = vpack.c.bf16 %v2352_v38, %v2352_v38  ;;  %v2580_v39 = vpack.c.bf16 %v2353_v7, %v2353_v7  ;;  %v2581_v45 = vpack.c.bf16 %v2354_v35, %v2354_v35 }
 0x461   : > { %v2582_v11 = vpack.c.bf16 %v2355_v47, %v2355_v47  ;;  %v2583_v41 = vpack.c.bf16 %v2356_v44, %v2356_v44  ;;  %v2584_v31 = vpack.c.bf16 %v2357_v63, %v2357_v63  ;;  %v2585_v60 = vpack.c.bf16 %v2358_v21, %v2358_v21 }
 0x462   : > { %v2587_v49 = vpack.c.bf16 %v2360_v29, %v2360_v29  ;;  %2401 = vst.msk [vmem:[%s332_s20] sm:$0xf] %vm2248_vm11, %v2578_v46  ;;  %2402 = vst.msk [vmem:[%s332_s20 + $0x4] sm:$0xf] %vm2248_vm11, %v2579_v27  ;;  %v2349_v34 = vadd.f32 %v2328_v36, %v2276_v19 }
 0x463   : > { %2403 = vst.msk [vmem:[%s332_s20 + $0x8] sm:$0xf] %vm2248_vm11, %v2580_v39  ;;  %2404 = vst.msk [vmem:[%s332_s20 + $0xc] sm:$0xf] %vm2248_vm11, %v2581_v45 }
 0x464   : > { %2405 = vst.msk [vmem:[%s332_s20 + $0x10] sm:$0xf] %vm2248_vm11, %v2582_v11  ;;  %2406 = vst.msk [vmem:[%s332_s20 + $0x14] sm:$0xf] %vm2248_vm11, %v2583_v41  ;;  %v2359_v17 = vmax.f32 %v2349_v34, 0.0 }
 0x465   : > { %2407 = vst.msk [vmem:[%s332_s20 + $0x18] sm:$0xf] %vm2248_vm11, %v2584_v31  ;;  %2408 = vst.msk [vmem:[%s332_s20 + $0x1c] sm:$0xf] %vm2248_vm11, %v2585_v60 }
 0x466   : > { %2410 = vst.msk [vmem:[%s332_s20 + $0x24] sm:$0xf] %vm2248_vm11, %v2587_v49  ;;  %v2586_v61 = vpack.c.bf16 %v2359_v17, %v2359_v17 }
 0x468   : > { %2409 = vst.msk [vmem:[%s332_s20 + $0x20] sm:$0xf] %vm2248_vm11, %v2586_v61 }
 0x469 PF: > { %s19_s30 = sadd.s32 1, %s2752_s30  }
 0x46a   : > { %p16_p4 = scmp.ge.s32.totalorder %s19_s30, 4  }
 0x46c   :  { %18 = sbr.rel (!%p16_p4) target bundleno = 1 (0x1), region = 86 }

</bundles_post_ra>
